<compile_context>
chip_gen: v7x
topology: tpu7x:2x2x1
jax: 0.10.0
libtpu: 0.0.40
codegen_flags: <defaults>
</compile_context>

<pallas_src>
import jax
import jax.numpy as jnp
from jax import lax
from jax.experimental import pallas as pl
from jax.experimental.pallas import tpu as pltpu


# --------------------------------------------------------------------------
# Small helpers
# --------------------------------------------------------------------------
def _round_up(x, m):
    return (x + m - 1) // m * m


def _cdiv(a, b):
    return -(-a // b)


def _choose_tiling(m, cap=512):
    """Pick a row-tile size: exact (rounded to 8) if small, else 512-row tiles."""
    if m <= cap:
        tm = _round_up(max(m, 8), 8)
        return tm, 1, tm
    tm = cap
    n_tiles = _cdiv(m, tm)
    return tm, n_tiles, n_tiles * tm


# --------------------------------------------------------------------------
# Pallas kernels
# --------------------------------------------------------------------------
def _conv_pool_relu_kernel(x_ref, w_ref, b_ref, o_ref):
    """Fused conv-matmul + bias + 2x2 maxpool + relu.

    x_ref: (4, tm, Kp)  -- the 4 taps of each pooling window, im2col'd rows
    w_ref: (Kp, OCp)    -- conv weights as a matmul operand (zero padded)
    b_ref: (1, OCp)     -- bias (zero padded)
    o_ref: (tm, OCp)    -- relu(max over the 4 taps + bias), lane-dense
    """
    w = w_ref[...]
    y0 = jnp.dot(x_ref[0], w, preferred_element_type=jnp.float32)
    y1 = jnp.dot(x_ref[1], w, preferred_element_type=jnp.float32)
    y2 = jnp.dot(x_ref[2], w, preferred_element_type=jnp.float32)
    y3 = jnp.dot(x_ref[3], w, preferred_element_type=jnp.float32)
    m = jnp.maximum(jnp.maximum(y0, y1), jnp.maximum(y2, y3))
    o_ref[...] = jnp.maximum(m + b_ref[...], 0.0)


def _linear_kernel(x_ref, w_ref, b_ref, o_ref):
    """o = x @ w + b  (MXU matmul + bias, fp32 accumulation, lane-dense)."""
    o_ref[...] = (
        jnp.dot(x_ref[...], w_ref[...], preferred_element_type=jnp.float32)
        + b_ref[...]
    )


# --------------------------------------------------------------------------
# Wrappers around pallas_call
# --------------------------------------------------------------------------
def conv_pool_relu_stage_nhwc(x_nhwc, w_oihw, b):
    """VALID conv (stride 1) + 2x2 maxpool + relu, fused.  NHWC in, NHWC out."""
    N, H, W, IC = x_nhwc.shape
    OC, _, KH, KW = w_oihw.shape
    OH, OW = H - KH + 1, W - KW + 1
    PH, PW = OH // 2, OW // 2
    K = KH * KW * IC
    Kp = _round_up(K, 128)
    OCp = _round_up(OC, 128)
    M = N * PH * PW
    tm, n_tiles, Mp = _choose_tiling(M)

    # ---- channel-last im2col (glue):  k = (kh*KW + kw)*IC + ic ----
    pats = jnp.stack(
        [x_nhwc[:, kh:kh + OH, kw:kw + OW, :]
         for kh in range(KH) for kw in range(KW)],
        axis=3,
    )                                              # (N, OH, OW, KH*KW, IC)
    # split conv coords into pooled coords + 2x2 pooling-tap offsets
    pats = pats.reshape(N, PH, 2, PW, 2, KH * KW, IC)
    pats = pats.transpose(2, 4, 0, 1, 3, 5, 6)     # (dy, dx, N, PH, PW, p, ic)
    taps = pats.reshape(4, M, K)

    # ---- exact zero-padding: rows to the tile grid, K and OC to 128 lanes ----
    taps = jnp.pad(taps, ((0, 0), (0, Mp - M), (0, Kp - K)))
    w_mat = w_oihw.transpose(2, 3, 1, 0).reshape(K, OC)   # rows in (kh,kw,ic)
    w_mat = jnp.pad(w_mat, ((0, Kp - K), (0, OCp - OC)))
    b_row = jnp.pad(b.reshape(1, OC), ((0, 0), (0, OCp - OC)))

    out = pl.pallas_call(
        _conv_pool_relu_kernel,
        out_shape=jax.ShapeDtypeStruct((Mp, OCp), jnp.float32),
        grid=(n_tiles,),
        in_specs=[
            pl.BlockSpec((4, tm, Kp), lambda i: (0, i, 0)),
            pl.BlockSpec((Kp, OCp), lambda i: (0, 0)),
            pl.BlockSpec((1, OCp), lambda i: (0, 0)),
        ],
        out_specs=pl.BlockSpec((tm, OCp), lambda i: (i, 0)),
        compiler_params=pltpu.CompilerParams(
            dimension_semantics=("parallel",)
        ),
    )(taps, w_mat, b_row)

    return out[:M, :OC].reshape(N, PH, PW, OC)     # stays NHWC


def linear_pallas(x, w, b):
    """x: (M, K), w: (K, N_out), b: (N_out,) -> (M, N_out), lane-padded inside."""
    M, K = x.shape
    N_out = w.shape[1]
    Kp = _round_up(K, 128)
    Np = _round_up(N_out, 128)
    tm, n_tiles, Mp = _choose_tiling(M)

    xp = jnp.pad(x, ((0, Mp - M), (0, Kp - K)))
    wp = jnp.pad(w, ((0, Kp - K), (0, Np - N_out)))
    bp = jnp.pad(b.reshape(1, N_out), ((0, 0), (0, Np - N_out)))

    out = pl.pallas_call(
        _linear_kernel,
        out_shape=jax.ShapeDtypeStruct((Mp, Np), jnp.float32),
        grid=(n_tiles,),
        in_specs=[
            pl.BlockSpec((tm, Kp), lambda i: (i, 0)),
            pl.BlockSpec((Kp, Np), lambda i: (0, 0)),
            pl.BlockSpec((1, Np), lambda i: (0, 0)),
        ],
        out_specs=pl.BlockSpec((tm, Np), lambda i: (i, 0)),
        compiler_params=pltpu.CompilerParams(
            dimension_semantics=("parallel",)
        ),
    )(xp, wp, bp)
    return out[:M, :N_out]


# --------------------------------------------------------------------------
# Forward pass (matches torch CNNModule.forward exactly)
# --------------------------------------------------------------------------
@jax.jit
def cnn_forward(x, params):
    conv1_w, conv1_b, conv2_w, conv2_b, fc_w, fc_b = params
    N = x.shape[0]

    h = jnp.transpose(x, (0, 2, 3, 1))                    # NCHW -> NHWC (C=1: free)
    h = conv_pool_relu_stage_nhwc(h, conv1_w, conv1_b)    # (N, 12, 12, 10)
    h = conv_pool_relu_stage_nhwc(h, conv2_w, conv2_b)    # (N, 5, 5, 20)

    _, PH, PW, OC = h.shape
    flat = h.reshape(N, PH * PW * OC)                     # NHWC flatten order
    # permute fc weight columns from torch's (c, ph, pw) flatten order to NHWC
    n_out = fc_w.shape[0]
    fc_w_nhwc = (fc_w.reshape(n_out, OC, PH, PW)
                     .transpose(0, 2, 3, 1)
                     .reshape(n_out, PH * PW * OC))
    return linear_pallas(flat, fc_w_nhwc.T, fc_b)         # (N, 10)


# --------------------------------------------------------------------------
# Pure-JAX reference (sanity check)
# --------------------------------------------------------------------------
def cnn_forward_ref(x, params):
    conv1_w, conv1_b, conv2_w, conv2_b, fc_w, fc_b = params

    def stage(h, w, b):
        y = lax.conv_general_dilated(
            h, w, (1, 1), "VALID",
            dimension_numbers=("NCHW", "OIHW", "NCHW"),
        ) + b[None, :, None, None]
        y = lax.reduce_window(
            y, -jnp.inf, lax.max, (1, 1, 2, 2), (1, 1, 2, 2), "VALID"
        )
        return jnp.maximum(y, 0.0)

    h = stage(x, conv1_w, conv1_b)
    h = stage(h, conv2_w, conv2_b)
    flat = h.reshape(x.shape[0], -1)
    return flat @ fc_w.T + fc_b


# --------------------------------------------------------------------------
# Main
# --------------------------------------------------------------------------
if __name__ == "__main__":
    import numpy as np

    key = jax.random.PRNGKey(0)
    kx, k1, k2, k3, k4, k5, k6 = jax.random.split(key, 7)

    # Spatial size is fixed by the module (28x28x1 -> fc in_features=500).
    N = 2
    x = jax.random.normal(kx, (N, 1, 28, 28), dtype=jnp.float32)

    def uinit(k, shape, fan_in):
        s = 1.0 / jnp.sqrt(jnp.float32(fan_in))
        return jax.random.uniform(k, shape, jnp.float32, -s, s)

    conv1_w = uinit(k1, (10, 1, 5, 5), 1 * 5 * 5)
    conv1_b = uinit(k2, (10,), 1 * 5 * 5)
    conv2_w = uinit(k3, (20, 10, 3, 3), 10 * 3 * 3)
    conv2_b = uinit(k4, (20,), 10 * 3 * 3)
    fc_w = uinit(k5, (10, 500), 500)   # torch Linear weight layout (out, in)
    fc_b = uinit(k6, (10,), 500)

    params = (conv1_w, conv1_b, conv2_w, conv2_b, fc_w, fc_b)

    out = jax.block_until_ready(cnn_forward(x, params))
    assert out.shape == (N, 10) and out.dtype == jnp.float32

    ref = jax.block_until_ready(cnn_forward_ref(x, params))
    np.testing.assert_allclose(np.asarray(out), np.asarray(ref),
                               rtol=1e-4, atol=1e-4)

    print("KERNEL_OK")
</pallas_src>

<mosaic_0001>
module attributes {stable_mosaic.version = 11 : i64} {
  func.func @_conv_pool_relu_kernel(%arg0: i32, %arg1: memref<4x288x128xf32, #tpu.memory_space<vmem>>, %arg2: memref<128x128xf32, #tpu.memory_space<vmem>>, %arg3: memref<1x128xf32, #tpu.memory_space<vmem>>, %arg4: memref<288x128xf32, #tpu.memory_space<vmem>>) attributes {dimension_semantics = [#tpu.dimension_semantics<parallel>], iteration_bounds = array<i64: 1>, scalar_prefetch = 0 : i64, scratch_operands = 0 : i64, tpu.core_type = #tpu.core_type<tc>, window_params = [{transform_indices = @transform_0, window_bounds = array<i64: 4, 288, 128>}, {pipeline_mode = #tpu.pipeline_mode<synchronous>, transform_indices = @transform_1, window_bounds = array<i64: 128, 128>}, {pipeline_mode = #tpu.pipeline_mode<synchronous>, transform_indices = @transform_2, window_bounds = array<i64: 1, 128>}, {transform_indices = @transform_3, window_bounds = array<i64: 288, 128>}]} {
    %c0 = arith.constant 0 : index
    %c0_0 = arith.constant 0 : index
    %0 = vector.load %arg2[%c0, %c0_0] : memref<128x128xf32, #tpu.memory_space<vmem>>, vector<128x128xf32>
    %c0_1 = arith.constant 0 : index
    %c0_2 = arith.constant 0 : index
    %c0_3 = arith.constant 0 : index
    %1 = vector.load %arg1[%c0_1, %c0_2, %c0_3] : memref<4x288x128xf32, #tpu.memory_space<vmem>>, vector<1x288x128xf32>
    %2 = vector.shape_cast %1 : vector<1x288x128xf32> to vector<288x128xf32>
    %cst = arith.constant dense<0.000000e+00> : vector<288x128xf32>
    %3 = tpu.matmul %2, %0, %cst {dimension_numbers = #tpu.dot_dimension_numbers<[1], [0], [0], [1], [0, 0, 1, 1], [], []>} : vector<288x128xf32>, vector<128x128xf32>, vector<288x128xf32> -> vector<288x128xf32>
    %c1 = arith.constant 1 : index
    %c0_4 = arith.constant 0 : index
    %c0_5 = arith.constant 0 : index
    %4 = vector.load %arg1[%c1, %c0_4, %c0_5] : memref<4x288x128xf32, #tpu.memory_space<vmem>>, vector<1x288x128xf32>
    %5 = vector.shape_cast %4 : vector<1x288x128xf32> to vector<288x128xf32>
    %cst_6 = arith.constant dense<0.000000e+00> : vector<288x128xf32>
    %6 = tpu.matmul %5, %0, %cst_6 {dimension_numbers = #tpu.dot_dimension_numbers<[1], [0], [0], [1], [0, 0, 1, 1], [], []>} : vector<288x128xf32>, vector<128x128xf32>, vector<288x128xf32> -> vector<288x128xf32>
    %c2 = arith.constant 2 : index
    %c0_7 = arith.constant 0 : index
    %c0_8 = arith.constant 0 : index
    %7 = vector.load %arg1[%c2, %c0_7, %c0_8] : memref<4x288x128xf32, #tpu.memory_space<vmem>>, vector<1x288x128xf32>
    %8 = vector.shape_cast %7 : vector<1x288x128xf32> to vector<288x128xf32>
    %cst_9 = arith.constant dense<0.000000e+00> : vector<288x128xf32>
    %9 = tpu.matmul %8, %0, %cst_9 {dimension_numbers = #tpu.dot_dimension_numbers<[1], [0], [0], [1], [0, 0, 1, 1], [], []>} : vector<288x128xf32>, vector<128x128xf32>, vector<288x128xf32> -> vector<288x128xf32>
    %c3 = arith.constant 3 : index
    %c0_10 = arith.constant 0 : index
    %c0_11 = arith.constant 0 : index
    %10 = vector.load %arg1[%c3, %c0_10, %c0_11] : memref<4x288x128xf32, #tpu.memory_space<vmem>>, vector<1x288x128xf32>
    %11 = vector.shape_cast %10 : vector<1x288x128xf32> to vector<288x128xf32>
    %cst_12 = arith.constant dense<0.000000e+00> : vector<288x128xf32>
    %12 = tpu.matmul %11, %0, %cst_12 {dimension_numbers = #tpu.dot_dimension_numbers<[1], [0], [0], [1], [0, 0, 1, 1], [], []>} : vector<288x128xf32>, vector<128x128xf32>, vector<288x128xf32> -> vector<288x128xf32>
    %13 = arith.maximumf %3, %6 : vector<288x128xf32>
    %14 = arith.maximumf %9, %12 : vector<288x128xf32>
    %15 = arith.maximumf %13, %14 : vector<288x128xf32>
    %c0_13 = arith.constant 0 : index
    %c0_14 = arith.constant 0 : index
    %16 = vector.load %arg3[%c0_13, %c0_14] : memref<1x128xf32, #tpu.memory_space<vmem>>, vector<1x128xf32>
    %17 = vector.broadcast %16 : vector<1x128xf32> to vector<288x128xf32>
    %18 = arith.addf %15, %17 : vector<288x128xf32>
    %cst_15 = arith.constant 0.000000e+00 : f32
    %19 = vector.broadcast %cst_15 : f32 to vector<288x128xf32>
    %20 = arith.maximumf %18, %19 : vector<288x128xf32>
    %c0_16 = arith.constant 0 : index
    %c0_17 = arith.constant 0 : index
    %21 = vector.load %arg4[%c0_16, %c0_17] : memref<288x128xf32, #tpu.memory_space<vmem>>, vector<288x128xf32>
    tpu.vector_store %arg4[%c0_16, %c0_17], %20 {strides = array<i32>} : memref<288x128xf32, #tpu.memory_space<vmem>>, vector<288x128xf32>,
    return
  }
  func.func @transform_0(%arg0: i32) -> (i32, i32, i32) {
    %c0_i32 = arith.constant 0 : i32
    %c0_i32_0 = arith.constant 0 : i32
    %c0_i32_1 = arith.constant 0 : i32
    return %c0_i32, %arg0, %c0_i32_0 : i32, i32, i32
  }
  func.func @transform_1(%arg0: i32) -> (i32, i32) {
    %c0_i32 = arith.constant 0 : i32
    %c0_i32_0 = arith.constant 0 : i32
    %c0_i32_1 = arith.constant 0 : i32
    return %c0_i32, %c0_i32_0 : i32, i32
  }
  func.func @transform_2(%arg0: i32) -> (i32, i32) {
    %c0_i32 = arith.constant 0 : i32
    %c0_i32_0 = arith.constant 0 : i32
    %c0_i32_1 = arith.constant 0 : i32
    return %c0_i32, %c0_i32_0 : i32, i32
  }
  func.func @transform_3(%arg0: i32) -> (i32, i32) {
    %c0_i32 = arith.constant 0 : i32
    %c0_i32_0 = arith.constant 0 : i32
    return %arg0, %c0_i32 : i32, i32
  }
}

module attributes {stable_mosaic.version = 11 : i64} {
  func.func @_conv_pool_relu_kernel(%arg0: i32, %arg1: memref<4x56x128xf32, #tpu.memory_space<vmem>>, %arg2: memref<128x128xf32, #tpu.memory_space<vmem>>, %arg3: memref<1x128xf32, #tpu.memory_space<vmem>>, %arg4: memref<56x128xf32, #tpu.memory_space<vmem>>) attributes {dimension_semantics = [#tpu.dimension_semantics<parallel>], iteration_bounds = array<i64: 1>, scalar_prefetch = 0 : i64, scratch_operands = 0 : i64, tpu.core_type = #tpu.core_type<tc>, window_params = [{transform_indices = @transform_0, window_bounds = array<i64: 4, 56, 128>}, {pipeline_mode = #tpu.pipeline_mode<synchronous>, transform_indices = @transform_1, window_bounds = array<i64: 128, 128>}, {pipeline_mode = #tpu.pipeline_mode<synchronous>, transform_indices = @transform_2, window_bounds = array<i64: 1, 128>}, {transform_indices = @transform_3, window_bounds = array<i64: 56, 128>}]} {
    %c0 = arith.constant 0 : index
    %c0_0 = arith.constant 0 : index
    %0 = vector.load %arg2[%c0, %c0_0] : memref<128x128xf32, #tpu.memory_space<vmem>>, vector<128x128xf32>
    %c0_1 = arith.constant 0 : index
    %c0_2 = arith.constant 0 : index
    %c0_3 = arith.constant 0 : index
    %1 = vector.load %arg1[%c0_1, %c0_2, %c0_3] : memref<4x56x128xf32, #tpu.memory_space<vmem>>, vector<1x56x128xf32>
    %2 = vector.shape_cast %1 : vector<1x56x128xf32> to vector<56x128xf32>
    %cst = arith.constant dense<0.000000e+00> : vector<56x128xf32>
    %3 = tpu.matmul %2, %0, %cst {dimension_numbers = #tpu.dot_dimension_numbers<[1], [0], [0], [1], [0, 0, 1, 1], [], []>} : vector<56x128xf32>, vector<128x128xf32>, vector<56x128xf32> -> vector<56x128xf32>
    %c1 = arith.constant 1 : index
    %c0_4 = arith.constant 0 : index
    %c0_5 = arith.constant 0 : index
    %4 = vector.load %arg1[%c1, %c0_4, %c0_5] : memref<4x56x128xf32, #tpu.memory_space<vmem>>, vector<1x56x128xf32>
    %5 = vector.shape_cast %4 : vector<1x56x128xf32> to vector<56x128xf32>
    %cst_6 = arith.constant dense<0.000000e+00> : vector<56x128xf32>
    %6 = tpu.matmul %5, %0, %cst_6 {dimension_numbers = #tpu.dot_dimension_numbers<[1], [0], [0], [1], [0, 0, 1, 1], [], []>} : vector<56x128xf32>, vector<128x128xf32>, vector<56x128xf32> -> vector<56x128xf32>
    %c2 = arith.constant 2 : index
    %c0_7 = arith.constant 0 : index
    %c0_8 = arith.constant 0 : index
    %7 = vector.load %arg1[%c2, %c0_7, %c0_8] : memref<4x56x128xf32, #tpu.memory_space<vmem>>, vector<1x56x128xf32>
    %8 = vector.shape_cast %7 : vector<1x56x128xf32> to vector<56x128xf32>
    %cst_9 = arith.constant dense<0.000000e+00> : vector<56x128xf32>
    %9 = tpu.matmul %8, %0, %cst_9 {dimension_numbers = #tpu.dot_dimension_numbers<[1], [0], [0], [1], [0, 0, 1, 1], [], []>} : vector<56x128xf32>, vector<128x128xf32>, vector<56x128xf32> -> vector<56x128xf32>
    %c3 = arith.constant 3 : index
    %c0_10 = arith.constant 0 : index
    %c0_11 = arith.constant 0 : index
    %10 = vector.load %arg1[%c3, %c0_10, %c0_11] : memref<4x56x128xf32, #tpu.memory_space<vmem>>, vector<1x56x128xf32>
    %11 = vector.shape_cast %10 : vector<1x56x128xf32> to vector<56x128xf32>
    %cst_12 = arith.constant dense<0.000000e+00> : vector<56x128xf32>
    %12 = tpu.matmul %11, %0, %cst_12 {dimension_numbers = #tpu.dot_dimension_numbers<[1], [0], [0], [1], [0, 0, 1, 1], [], []>} : vector<56x128xf32>, vector<128x128xf32>, vector<56x128xf32> -> vector<56x128xf32>
    %13 = arith.maximumf %3, %6 : vector<56x128xf32>
    %14 = arith.maximumf %9, %12 : vector<56x128xf32>
    %15 = arith.maximumf %13, %14 : vector<56x128xf32>
    %c0_13 = arith.constant 0 : index
    %c0_14 = arith.constant 0 : index
    %16 = vector.load %arg3[%c0_13, %c0_14] : memref<1x128xf32, #tpu.memory_space<vmem>>, vector<1x128xf32>
    %17 = vector.broadcast %16 : vector<1x128xf32> to vector<56x128xf32>
    %18 = arith.addf %15, %17 : vector<56x128xf32>
    %cst_15 = arith.constant 0.000000e+00 : f32
    %19 = vector.broadcast %cst_15 : f32 to vector<56x128xf32>
    %20 = arith.maximumf %18, %19 : vector<56x128xf32>
    %c0_16 = arith.constant 0 : index
    %c0_17 = arith.constant 0 : index
    %21 = vector.load %arg4[%c0_16, %c0_17] : memref<56x128xf32, #tpu.memory_space<vmem>>, vector<56x128xf32>
    tpu.vector_store %arg4[%c0_16, %c0_17], %20 {strides = array<i32>} : memref<56x128xf32, #tpu.memory_space<vmem>>, vector<56x128xf32>,
    return
  }
  func.func @transform_0(%arg0: i32) -> (i32, i32, i32) {
    %c0_i32 = arith.constant 0 : i32
    %c0_i32_0 = arith.constant 0 : i32
    %c0_i32_1 = arith.constant 0 : i32
    return %c0_i32, %arg0, %c0_i32_0 : i32, i32, i32
  }
  func.func @transform_1(%arg0: i32) -> (i32, i32) {
    %c0_i32 = arith.constant 0 : i32
    %c0_i32_0 = arith.constant 0 : i32
    %c0_i32_1 = arith.constant 0 : i32
    return %c0_i32, %c0_i32_0 : i32, i32
  }
  func.func @transform_2(%arg0: i32) -> (i32, i32) {
    %c0_i32 = arith.constant 0 : i32
    %c0_i32_0 = arith.constant 0 : i32
    %c0_i32_1 = arith.constant 0 : i32
    return %c0_i32, %c0_i32_0 : i32, i32
  }
  func.func @transform_3(%arg0: i32) -> (i32, i32) {
    %c0_i32 = arith.constant 0 : i32
    %c0_i32_0 = arith.constant 0 : i32
    return %arg0, %c0_i32 : i32, i32
  }
}

module attributes {stable_mosaic.version = 11 : i64} {
  func.func @_linear_kernel(%arg0: i32, %arg1: memref<8x512xf32, #tpu.memory_space<vmem>>, %arg2: memref<512x128xf32, #tpu.memory_space<vmem>>, %arg3: memref<1x128xf32, #tpu.memory_space<vmem>>, %arg4: memref<8x128xf32, #tpu.memory_space<vmem>>) attributes {dimension_semantics = [#tpu.dimension_semantics<parallel>], iteration_bounds = array<i64: 1>, scalar_prefetch = 0 : i64, scratch_operands = 0 : i64, tpu.core_type = #tpu.core_type<tc>, window_params = [{transform_indices = @transform_0, window_bounds = array<i64: 8, 512>}, {pipeline_mode = #tpu.pipeline_mode<synchronous>, transform_indices = @transform_1, window_bounds = array<i64: 512, 128>}, {pipeline_mode = #tpu.pipeline_mode<synchronous>, transform_indices = @transform_2, window_bounds = array<i64: 1, 128>}, {transform_indices = @transform_3, window_bounds = array<i64: 8, 128>}]} {
    %c0 = arith.constant 0 : index
    %c0_0 = arith.constant 0 : index
    %0 = vector.load %arg1[%c0, %c0_0] : memref<8x512xf32, #tpu.memory_space<vmem>>, vector<8x512xf32>
    %c0_1 = arith.constant 0 : index
    %c0_2 = arith.constant 0 : index
    %1 = vector.load %arg2[%c0_1, %c0_2] : memref<512x128xf32, #tpu.memory_space<vmem>>, vector<512x128xf32>
    %cst = arith.constant dense<0.000000e+00> : vector<8x128xf32>
    %2 = tpu.matmul %0, %1, %cst {dimension_numbers = #tpu.dot_dimension_numbers<[1], [0], [0], [1], [0, 0, 1, 1], [], []>} : vector<8x512xf32>, vector<512x128xf32>, vector<8x128xf32> -> vector<8x128xf32>
    %c0_3 = arith.constant 0 : index
    %c0_4 = arith.constant 0 : index
    %3 = vector.load %arg3[%c0_3, %c0_4] : memref<1x128xf32, #tpu.memory_space<vmem>>, vector<1x128xf32>
    %4 = vector.broadcast %3 : vector<1x128xf32> to vector<8x128xf32>
    %5 = arith.addf %2, %4 : vector<8x128xf32>
    %c0_5 = arith.constant 0 : index
    %c0_6 = arith.constant 0 : index
    %6 = vector.load %arg4[%c0_5, %c0_6] : memref<8x128xf32, #tpu.memory_space<vmem>>, vector<8x128xf32>
    tpu.vector_store %arg4[%c0_5, %c0_6], %5 {strides = array<i32>} : memref<8x128xf32, #tpu.memory_space<vmem>>, vector<8x128xf32>,
    return
  }
  func.func @transform_0(%arg0: i32) -> (i32, i32) {
    %c0_i32 = arith.constant 0 : i32
    %c0_i32_0 = arith.constant 0 : i32
    return %arg0, %c0_i32 : i32, i32
  }
  func.func @transform_1(%arg0: i32) -> (i32, i32) {
    %c0_i32 = arith.constant 0 : i32
    %c0_i32_0 = arith.constant 0 : i32
    %c0_i32_1 = arith.constant 0 : i32
    return %c0_i32, %c0_i32_0 : i32, i32
  }
  func.func @transform_2(%arg0: i32) -> (i32, i32) {
    %c0_i32 = arith.constant 0 : i32
    %c0_i32_0 = arith.constant 0 : i32
    %c0_i32_1 = arith.constant 0 : i32
    return %c0_i32, %c0_i32_0 : i32, i32
  }
  func.func @transform_3(%arg0: i32) -> (i32, i32) {
    %c0_i32 = arith.constant 0 : i32
    %c0_i32_0 = arith.constant 0 : i32
    return %arg0, %c0_i32 : i32, i32
  }
}

</mosaic_0001>

<bundles_post_ra>
// kernel: cnn_forward.3
= control target key start
LH: loop header
LB: loop body
LE: loop exit
PB: predicated region body
PF: predicated region fallthrough
CT: control target
= control target key end

     0   :  { %s3226_s1 = inlined_call_operand.vmem [shape: f32[128,128], index: 1, kind: input, shape index: {}]   ;;  %s3227_s0 = inlined_call_operand.vmem [shape: f32[4,288,128], index: 0, kind: input, shape index: {}]   ;;  %s3228_s2 = inlined_call_operand.vmem [shape: f32[1,128], index: 2, kind: input, shape index: {}]   ;;  %s3229_s3 = inlined_call_operand.vmem [shape: f32[288,128], index: 3, kind: output, shape index: {}]  }
   0x1   :  { %v14_v0 = vld [vmem:[%s3226_s1] sm:$0xff]  ;;  %v15_v1 = vld [vmem:[%s3226_s1 + $0x8] sm:$0xff]  ;;  %v16_v2 = vld [vmem:[%s3226_s1 + $0x10] sm:$0xff] }
   0x2   :  { %v2202_v3 = vpack.c.bf16 %v15_v1, %v14_v0  ;;  %v17_v4 = vld [vmem:[%s3226_s1 + $0x18] sm:$0xff]  ;;  %v18_v6 = vld [vmem:[%s3226_s1 + $0x20] sm:$0xff]  ;;  %v19_v7 = vld [vmem:[%s3226_s1 + $0x28] sm:$0xff] }
   0x3   :  { %v2207_v5 = vpack.c.bf16 %v17_v4, %v16_v2  ;;  %v2221_v8 = vpack.c.bf16 %v19_v7, %v18_v6  ;;  %v30_v9 = vld [vmem:[%s3227_s0] sm:$0xff]  ;;  %v20_v11 = vld [vmem:[%s3226_s1 + $0x30] sm:$0xff]  ;;  %v21_v12 = vld [vmem:[%s3226_s1 + $0x38] sm:$0xff] }
   0x4   :  { %2046 = vmatprep.subr.bf16.mxu0 %v2202_v3  ;;  %2078 = vmatprep.subr.bf16.mxu1 %v2202_v3  ;;  %v1384_v10 = vld [vmem:[%s3227_s0 + $0x120] sm:$0xff]  ;;  %v2239_v13 = vpack.c.bf16 %v21_v12, %v20_v11  ;;  %v23_v15 = vld [vmem:[%s3226_s1 + $0x48] sm:$0xff]  ;;  %v24_v17 = vld [vmem:[%s3226_s1 + $0x50] sm:$0xff] }
   0x5   :  { %2048 = vmatpush3.bf16.msra.mxu0 %v2202_v3  ;;  %2080 = vmatpush3.bf16.msra.mxu1 %v2202_v3  ;;  %v22_v14 = vld [vmem:[%s3226_s1 + $0x40] sm:$0xff]  ;;  %v25_v18 = vld [vmem:[%s3226_s1 + $0x58] sm:$0xff]  ;;  %v27_v21 = vld [vmem:[%s3226_s1 + $0x68] sm:$0xff] }
   0x6   :  { %2050 = vmatprep.subr.bf16.mxu0 %v2207_v5  ;;  %2082 = vmatprep.subr.bf16.mxu1 %v2207_v5  ;;  %v2251_v16 = vpack.c.bf16 %v23_v15, %v22_v14  ;;  %v2263_v19 = vpack.c.bf16 %v25_v18, %v24_v17  ;;  %v26_v20 = vld [vmem:[%s3226_s1 + $0x60] sm:$0xff]  ;;  %v28_v23 = vld [vmem:[%s3226_s1 + $0x70] sm:$0xff]  ;;  %v29_v24 = vld [vmem:[%s3226_s1 + $0x78] sm:$0xff] }
   0x7   :  { %1733 = vmatprep.mubr.f32.mxu0 %v30_v9  ;;  %1819 = vmatprep.mubr.f32.mxu1 %v1384_v10  ;;  %v2275_v22 = vpack.c.bf16 %v27_v21, %v26_v20  ;;  %v2287_v25 = vpack.c.bf16 %v29_v24, %v28_v23  ;;  %v31_v26 = vld [vmem:[%s3227_s0 + $0x8] sm:$0xff]  ;;  %v32_v28 = vld [vmem:[%s3227_s0 + $0x10] sm:$0xff]  ;;  %v33_v30 = vld [vmem:[%s3227_s0 + $0x18] sm:$0xff] }
   0x8   :  { %v1385_v27 = vld [vmem:[%s3227_s0 + $0x128] sm:$0xff]  ;;  %v1386_v29 = vld [vmem:[%s3227_s0 + $0x130] sm:$0xff]  ;;  %v1387_v31 = vld [vmem:[%s3227_s0 + $0x138] sm:$0xff] }
   0x9   :  { %2052 = vmatpush3.bf16.msra.mxu0 %v2207_v5  ;;  %2084 = vmatpush3.bf16.msra.mxu1 %v2207_v5  ;;  %v34_v32 = vld [vmem:[%s3227_s0 + $0x20] sm:$0xff]  ;;  %v35_v34 = vld [vmem:[%s3227_s0 + $0x28] sm:$0xff]  ;;  %v36_v36 = vld [vmem:[%s3227_s0 + $0x30] sm:$0xff] }
   0xa   :  { %2054 = vmatprep.subr.bf16.mxu0 %v2221_v8  ;;  %2086 = vmatprep.subr.bf16.mxu1 %v2221_v8  ;;  %v1388_v33 = vld [vmem:[%s3227_s0 + $0x140] sm:$0xff]  ;;  %v1389_v35 = vld [vmem:[%s3227_s0 + $0x148] sm:$0xff]  ;;  %v1390_v37 = vld [vmem:[%s3227_s0 + $0x150] sm:$0xff] }
   0xb   :  { %v37_v38 = vld [vmem:[%s3227_s0 + $0x38] sm:$0xff]  ;;  %v38_v40 = vld [vmem:[%s3227_s0 + $0x40] sm:$0xff]  ;;  %v39_v42 = vld [vmem:[%s3227_s0 + $0x48] sm:$0xff] }
   0xc   :  { %v1391_v39 = vld [vmem:[%s3227_s0 + $0x158] sm:$0xff]  ;;  %v1392_v41 = vld [vmem:[%s3227_s0 + $0x160] sm:$0xff]  ;;  %v1393_v43 = vld [vmem:[%s3227_s0 + $0x168] sm:$0xff] }
   0xd   :  { %2056 = vmatpush3.bf16.msra.mxu0 %v2221_v8  ;;  %2088 = vmatpush3.bf16.msra.mxu1 %v2221_v8  ;;  %v40_v44 = vld [vmem:[%s3227_s0 + $0x50] sm:$0xff]  ;;  %v41_v46 = vld [vmem:[%s3227_s0 + $0x58] sm:$0xff]  ;;  %v42_v48 = vld [vmem:[%s3227_s0 + $0x60] sm:$0xff] }
   0xe   :  { %2058 = vmatprep.subr.bf16.mxu0 %v2239_v13  ;;  %2090 = vmatprep.subr.bf16.mxu1 %v2239_v13  ;;  %v1394_v45 = vld [vmem:[%s3227_s0 + $0x170] sm:$0xff]  ;;  %v1395_v47 = vld [vmem:[%s3227_s0 + $0x178] sm:$0xff]  ;;  %v1396_v49 = vld [vmem:[%s3227_s0 + $0x180] sm:$0xff] }
   0xf   :  { %v43_v50 = vld [vmem:[%s3227_s0 + $0x68] sm:$0xff]  ;;  %v44_v52 = vld [vmem:[%s3227_s0 + $0x70] sm:$0xff]  ;;  %v45_v54 = vld [vmem:[%s3227_s0 + $0x78] sm:$0xff] }
  0x10   :  { %v1397_v51 = vld [vmem:[%s3227_s0 + $0x188] sm:$0xff]  ;;  %v1398_v53 = vld [vmem:[%s3227_s0 + $0x190] sm:$0xff]  ;;  %v1399_v55 = vld [vmem:[%s3227_s0 + $0x198] sm:$0xff] }
  0x11   :  { %2060 = vmatpush3.bf16.msra.mxu0 %v2239_v13  ;;  %2092 = vmatpush3.bf16.msra.mxu1 %v2239_v13  ;;  %v46_v56 = vld [vmem:[%s3227_s0 + $0x80] sm:$0xff]  ;;  %v47_v58 = vld [vmem:[%s3227_s0 + $0x88] sm:$0xff]  ;;  %v48_v60 = vld [vmem:[%s3227_s0 + $0x90] sm:$0xff] }
  0x12   :  { %2062 = vmatprep.subr.bf16.mxu0 %v2251_v16  ;;  %2094 = vmatprep.subr.bf16.mxu1 %v2251_v16  ;;  %v1400_v57 = vld [vmem:[%s3227_s0 + $0x1a0] sm:$0xff]  ;;  %v1401_v59 = vld [vmem:[%s3227_s0 + $0x1a8] sm:$0xff]  ;;  %v1402_v61 = vld [vmem:[%s3227_s0 + $0x1b0] sm:$0xff] }
  0x13   :  { %v49_v62 = vld [vmem:[%s3227_s0 + $0x98] sm:$0xff]  ;;  %v50_v0 = vld [vmem:[%s3227_s0 + $0xa0] sm:$0xff]  ;;  %v51_v2 = vld [vmem:[%s3227_s0 + $0xa8] sm:$0xff] }
  0x14   :  { %v1403_v63 = vld [vmem:[%s3227_s0 + $0x1b8] sm:$0xff]  ;;  %v1404_v1 = vld [vmem:[%s3227_s0 + $0x1c0] sm:$0xff]  ;;  %v52_v4 = vld [vmem:[%s3227_s0 + $0xb0] sm:$0xff] }
  0x15   :  { %2064 = vmatpush3.bf16.msra.mxu0 %v2251_v16  ;;  %2096 = vmatpush3.bf16.msra.mxu1 %v2251_v16  ;;  %v53_v6 = vld [vmem:[%s3227_s0 + $0xb8] sm:$0xff]  ;;  %v1408_v9 = vld [vmem:[%s3227_s0 + $0x1e0] sm:$0xff]  ;;  %v55_v10 = vld [vmem:[%s3227_s0 + $0xc8] sm:$0xff] }
  0x16   :  { %2066 = vmatprep.subr.bf16.mxu0 %v2263_v19  ;;  %2098 = vmatprep.subr.bf16.mxu1 %v2263_v19  ;;  %v1407_v7 = vld [vmem:[%s3227_s0 + $0x1d8] sm:$0xff]  ;;  %v1409_v11 = vld [vmem:[%s3227_s0 + $0x1e8] sm:$0xff]  ;;  %v56_v12 = vld [vmem:[%s3227_s0 + $0xd0] sm:$0xff] }
  0x17   :  { %v57_v14 = vld [vmem:[%s3227_s0 + $0xd8] sm:$0xff]  ;;  %v1412_v17 = vld [vmem:[%s3227_s0 + $0x200] sm:$0xff]  ;;  %v59_v18 = vld [vmem:[%s3227_s0 + $0xe8] sm:$0xff] }
  0x18   :  { %v1411_v15 = vld [vmem:[%s3227_s0 + $0x1f8] sm:$0xff]  ;;  %v60_v20 = vld [vmem:[%s3227_s0 + $0xf0] sm:$0xff]  ;;  %v62_v24 = vld [vmem:[%s3227_s0 + $0x100] sm:$0xff] }
  0x19   :  { %2068 = vmatpush3.bf16.msra.mxu0 %v2263_v19  ;;  %2100 = vmatpush3.bf16.msra.mxu1 %v2263_v19  ;;  %v1414_v21 = vld [vmem:[%s3227_s0 + $0x210] sm:$0xff]  ;;  %v1415_v23 = vld [vmem:[%s3227_s0 + $0x218] sm:$0xff] }
  0x1a   :  { %2070 = vmatprep.subr.bf16.mxu0 %v2275_v22  ;;  %2102 = vmatprep.subr.bf16.mxu1 %v2275_v22 }
  0x1d   :  { %2072 = vmatpush3.bf16.msra.mxu0 %v2275_v22  ;;  %2104 = vmatpush3.bf16.msra.mxu1 %v2275_v22 }
  0x1e   :  { %2074 = vmatprep.subr.bf16.mxu0 %v2287_v25  ;;  %2106 = vmatprep.subr.bf16.mxu1 %v2287_v25 }
  0x21   :  { %2076 = vmatpush3.bf16.msra.mxu0 %v2287_v25  ;;  %2108 = vmatpush3.bf16.msra.mxu1 %v2287_v25 }
  0x22   :  { %2110 = vmatprep.subr.bf16.mxu0 %v2202_v3  ;;  %2142 = vmatprep.subr.bf16.mxu1 %v2202_v3 }
  0x24   :  { %1734 = vmatmul.mubr.f32.vlgmr.msra.gmra.mrb[0].mxu0 %v31_v26  ;;  %1820 = vmatmul.mubr.f32.vlgmr.msra.gmra.mrb[0].mxu1 %v1385_v27  ;;  %v63_v26 = vld [vmem:[%s3227_s0 + $0x108] sm:$0xff] }
  0x25   :  { %2112 = vmatpush3.bf16.msra.mxu0 %v2202_v3  ;;  %2144 = vmatpush3.bf16.msra.mxu1 %v2202_v3  ;;  %v1405_v3 = vld [vmem:[%s3227_s0 + $0x1c8] sm:$0xff] }
  0x26   :  { %1736 = vmatprep.mubr.f32.mxu0 %v32_v28  ;;  %1822 = vmatprep.mubr.f32.mxu1 %v1386_v29  ;;  %v1417_v27 = vld [vmem:[%s3227_s0 + $0x228] sm:$0xff]  ;;  %v64_v28 = vld [vmem:[%s3227_s0 + $0x110] sm:$0xff] }
  0x27   :  { %2114 = vmatprep.subr.bf16.mxu0 %v2207_v5  ;;  %2146 = vmatprep.subr.bf16.mxu1 %v2207_v5  ;;  %v1418_v29 = vld [vmem:[%s3227_s0 + $0x230] sm:$0xff] }
  0x28   :  { %1737 = vmatmul.mubr.f32.gmra.mrb[2].mxu0 %v33_v30  ;;  %1823 = vmatmul.mubr.f32.gmra.mrb[2].mxu1 %v1387_v31  ;;  %v65_v30 = vld [vmem:[%s3227_s0 + $0x118] sm:$0xff] }
  0x29   :  { %1739 = vmatprep.mubr.f32.mxu0 %v34_v32  ;;  %1825 = vmatprep.mubr.f32.mxu1 %v1388_v33  ;;  %v1419_v31 = vld [vmem:[%s3227_s0 + $0x238] sm:$0xff]  ;;  %v1420_v32 = vld [vmem:[%s3227_s0 + $0x240] sm:$0xff] }
  0x2a   :  { %2116 = vmatpush3.bf16.msra.mxu0 %v2207_v5  ;;  %2148 = vmatpush3.bf16.msra.mxu1 %v2207_v5  ;;  %v1406_v5 = vld [vmem:[%s3227_s0 + $0x1d0] sm:$0xff]  ;;  %v1456_v33 = vld [vmem:[%s3227_s0 + $0x360] sm:$0xff] }
  0x2b   :  { %2118 = vmatprep.subr.bf16.mxu0 %v2221_v8  ;;  %2150 = vmatprep.subr.bf16.mxu1 %v2221_v8 }
  0x2c   :  { %1740 = vmatmul.mubr.f32.gmra.mrb[4].mxu0 %v35_v34  ;;  %1826 = vmatmul.mubr.f32.gmra.mrb[4].mxu1 %v1389_v35  ;;  %v1421_v34 = vld [vmem:[%s3227_s0 + $0x248] sm:$0xff] }
  0x2d   :  { %1742 = vmatprep.mubr.f32.mxu0 %v36_v36  ;;  %1828 = vmatprep.mubr.f32.mxu1 %v1390_v37  ;;  %v1457_v35 = vld [vmem:[%s3227_s0 + $0x368] sm:$0xff]  ;;  %v1422_v36 = vld [vmem:[%s3227_s0 + $0x250] sm:$0xff] }
  0x2e   :  { %2120 = vmatpush3.bf16.msra.mxu0 %v2221_v8  ;;  %2152 = vmatpush3.bf16.msra.mxu1 %v2221_v8  ;;  %v54_v8 = vld [vmem:[%s3227_s0 + $0xc0] sm:$0xff]  ;;  %v1458_v37 = vld [vmem:[%s3227_s0 + $0x370] sm:$0xff] }
  0x2f   :  { %2122 = vmatprep.subr.bf16.mxu0 %v2239_v13  ;;  %2154 = vmatprep.subr.bf16.mxu1 %v2239_v13 }
  0x30   :  { %1743 = vmatmul.mubr.f32.gmra.mrb[6].mxu0 %v37_v38  ;;  %1829 = vmatmul.mubr.f32.gmra.mrb[6].mxu1 %v1391_v39  ;;  %v1423_v38 = vld [vmem:[%s3227_s0 + $0x258] sm:$0xff] }
  0x31   :  { %1745 = vmatprep.mubr.f32.mxu0 %v38_v40  ;;  %1831 = vmatprep.mubr.f32.mxu1 %v1392_v41  ;;  %v1459_v39 = vld [vmem:[%s3227_s0 + $0x378] sm:$0xff]  ;;  %v1424_v40 = vld [vmem:[%s3227_s0 + $0x260] sm:$0xff] }
  0x32   :  { %2124 = vmatpush3.bf16.msra.mxu0 %v2239_v13  ;;  %2156 = vmatpush3.bf16.msra.mxu1 %v2239_v13  ;;  %v1410_v13 = vld [vmem:[%s3227_s0 + $0x1f0] sm:$0xff]  ;;  %v1460_v41 = vld [vmem:[%s3227_s0 + $0x380] sm:$0xff] }
  0x33   :  { %2126 = vmatprep.subr.bf16.mxu0 %v2251_v16  ;;  %2158 = vmatprep.subr.bf16.mxu1 %v2251_v16 }
  0x34   :  { %1746 = vmatmul.mubr.f32.gmra.mrb[8].mxu0 %v39_v42  ;;  %1832 = vmatmul.mubr.f32.gmra.mrb[8].mxu1 %v1393_v43  ;;  %v1425_v42 = vld [vmem:[%s3227_s0 + $0x268] sm:$0xff] }
  0x35   :  { %1748 = vmatprep.mubr.f32.mxu0 %v40_v44  ;;  %1834 = vmatprep.mubr.f32.mxu1 %v1394_v45  ;;  %v1461_v43 = vld [vmem:[%s3227_s0 + $0x388] sm:$0xff]  ;;  %v1426_v44 = vld [vmem:[%s3227_s0 + $0x270] sm:$0xff] }
  0x36   :  { %2128 = vmatpush3.bf16.msra.mxu0 %v2251_v16  ;;  %2160 = vmatpush3.bf16.msra.mxu1 %v2251_v16  ;;  %v58_v16 = vld [vmem:[%s3227_s0 + $0xe0] sm:$0xff]  ;;  %v1462_v45 = vld [vmem:[%s3227_s0 + $0x390] sm:$0xff] }
  0x37   :  { %2130 = vmatprep.subr.bf16.mxu0 %v2263_v19  ;;  %2162 = vmatprep.subr.bf16.mxu1 %v2263_v19 }
  0x38   :  { %1749 = vmatmul.mubr.f32.gmra.mrb[10].mxu0 %v41_v46  ;;  %1835 = vmatmul.mubr.f32.gmra.mrb[10].mxu1 %v1395_v47  ;;  %v1427_v46 = vld [vmem:[%s3227_s0 + $0x278] sm:$0xff] }
  0x39   :  { %1751 = vmatprep.mubr.f32.mxu0 %v42_v48  ;;  %1837 = vmatprep.mubr.f32.mxu1 %v1396_v49  ;;  %v1463_v47 = vld [vmem:[%s3227_s0 + $0x398] sm:$0xff]  ;;  %v1428_v48 = vld [vmem:[%s3227_s0 + $0x280] sm:$0xff] }
  0x3a   :  { %2132 = vmatpush3.bf16.msra.mxu0 %v2263_v19  ;;  %2164 = vmatpush3.bf16.msra.mxu1 %v2263_v19  ;;  %v1413_v19 = vld [vmem:[%s3227_s0 + $0x208] sm:$0xff]  ;;  %v1464_v49 = vld [vmem:[%s3227_s0 + $0x3a0] sm:$0xff] }
  0x3b   :  { %2134 = vmatprep.subr.bf16.mxu0 %v2275_v22  ;;  %2166 = vmatprep.subr.bf16.mxu1 %v2275_v22 }
  0x3c   :  { %1752 = vmatmul.mubr.f32.gmra.mrb[12].mxu0 %v43_v50  ;;  %1838 = vmatmul.mubr.f32.gmra.mrb[12].mxu1 %v1397_v51  ;;  %v1429_v50 = vld [vmem:[%s3227_s0 + $0x288] sm:$0xff] }
  0x3d   :  { %1754 = vmatprep.mubr.f32.mxu0 %v44_v52  ;;  %1840 = vmatprep.mubr.f32.mxu1 %v1398_v53  ;;  %v1465_v51 = vld [vmem:[%s3227_s0 + $0x3a8] sm:$0xff]  ;;  %v1430_v52 = vld [vmem:[%s3227_s0 + $0x290] sm:$0xff] }
  0x3e   :  { %2136 = vmatpush3.bf16.msra.mxu0 %v2275_v22  ;;  %2168 = vmatpush3.bf16.msra.mxu1 %v2275_v22  ;;  %v61_v22 = vld [vmem:[%s3227_s0 + $0xf8] sm:$0xff]  ;;  %v1466_v53 = vld [vmem:[%s3227_s0 + $0x3b0] sm:$0xff] }
  0x3f   :  { %2138 = vmatprep.subr.bf16.mxu0 %v2287_v25  ;;  %2170 = vmatprep.subr.bf16.mxu1 %v2287_v25 }
  0x40   :  { %1755 = vmatmul.mubr.f32.gmra.mrb[14].mxu0 %v45_v54  ;;  %1841 = vmatmul.mubr.f32.gmra.mrb[14].mxu1 %v1399_v55  ;;  %v1431_v54 = vld [vmem:[%s3227_s0 + $0x298] sm:$0xff] }
  0x41   :  { %1757 = vmatprep.mubr.f32.mxu0 %v46_v56  ;;  %1843 = vmatprep.mubr.f32.mxu1 %v1400_v57  ;;  %v1467_v55 = vld [vmem:[%s3227_s0 + $0x3b8] sm:$0xff]  ;;  %v1432_v56 = vld [vmem:[%s3227_s0 + $0x2a0] sm:$0xff] }
  0x42   :  { %2140 = vmatpush3.bf16.msra.mxu0 %v2287_v25  ;;  %2172 = vmatpush3.bf16.msra.mxu1 %v2287_v25  ;;  %v1416_v25 = vld [vmem:[%s3227_s0 + $0x220] sm:$0xff] }
  0x43   :  { %v1468_v57 = vld [vmem:[%s3227_s0 + $0x3c0] sm:$0xff] }
  0x44   :  { %1758 = vmatmul.mubr.f32.gmra.mrb[16].mxu0 %v47_v58  ;;  %1844 = vmatmul.mubr.f32.gmra.mrb[16].mxu1 %v1401_v59  ;;  %v1433_v58 = vld [vmem:[%s3227_s0 + $0x2a8] sm:$0xff] }
  0x45   :  { %1760 = vmatprep.mubr.f32.mxu0 %v48_v60  ;;  %1846 = vmatprep.mubr.f32.mxu1 %v1402_v61  ;;  %v1469_v59 = vld [vmem:[%s3227_s0 + $0x3c8] sm:$0xff]  ;;  %v1434_v60 = vld [vmem:[%s3227_s0 + $0x2b0] sm:$0xff] }
  0x46   :  { %v1470_v61 = vld [vmem:[%s3227_s0 + $0x3d0] sm:$0xff] }
  0x48   :  { %1761 = vmatmul.mubr.f32.gmra.mrb[18].mxu0 %v49_v62  ;;  %1847 = vmatmul.mubr.f32.gmra.mrb[18].mxu1 %v1403_v63  ;;  %v1435_v62 = vld [vmem:[%s3227_s0 + $0x2b8] sm:$0xff] }
  0x49   :  { %1763 = vmatprep.mubr.f32.mxu0 %v50_v0  ;;  %1849 = vmatprep.mubr.f32.mxu1 %v1404_v1  ;;  %v1471_v63 = vld [vmem:[%s3227_s0 + $0x3d8] sm:$0xff]  ;;  %v1436_v0 = vld [vmem:[%s3227_s0 + $0x2c0] sm:$0xff] }
  0x4a   :  { %v1472_v1 = vld [vmem:[%s3227_s0 + $0x3e0] sm:$0xff] }
  0x4c   :  { %1764 = vmatmul.mubr.f32.gmra.mrb[20].mxu0 %v51_v2  ;;  %1850 = vmatmul.mubr.f32.gmra.mrb[20].mxu1 %v1405_v3  ;;  %v1437_v2 = vld [vmem:[%s3227_s0 + $0x2c8] sm:$0xff] }
  0x4d   :  { %1766 = vmatprep.mubr.f32.mxu0 %v52_v4  ;;  %1852 = vmatprep.mubr.f32.mxu1 %v1406_v5  ;;  %v1473_v3 = vld [vmem:[%s3227_s0 + $0x3e8] sm:$0xff]  ;;  %v1438_v4 = vld [vmem:[%s3227_s0 + $0x2d0] sm:$0xff] }
  0x4e   :  { %v1474_v5 = vld [vmem:[%s3227_s0 + $0x3f0] sm:$0xff] }
  0x50   :  { %1767 = vmatmul.mubr.f32.gmra.mrb[22].mxu0 %v53_v6  ;;  %1853 = vmatmul.mubr.f32.gmra.mrb[22].mxu1 %v1407_v7  ;;  %v1439_v6 = vld [vmem:[%s3227_s0 + $0x2d8] sm:$0xff] }
  0x51   :  { %1769 = vmatprep.mubr.f32.mxu0 %v54_v8  ;;  %1855 = vmatprep.mubr.f32.mxu1 %v1408_v9  ;;  %v1475_v7 = vld [vmem:[%s3227_s0 + $0x3f8] sm:$0xff]  ;;  %v1440_v8 = vld [vmem:[%s3227_s0 + $0x2e0] sm:$0xff] }
  0x52   :  { %v1476_v9 = vld [vmem:[%s3227_s0 + $0x400] sm:$0xff] }
  0x54   :  { %1770 = vmatmul.mubr.f32.gmra.mrb[24].mxu0 %v55_v10  ;;  %1856 = vmatmul.mubr.f32.gmra.mrb[24].mxu1 %v1409_v11  ;;  %v1441_v10 = vld [vmem:[%s3227_s0 + $0x2e8] sm:$0xff] }
  0x55   :  { %1772 = vmatprep.mubr.f32.mxu0 %v56_v12  ;;  %1858 = vmatprep.mubr.f32.mxu1 %v1410_v13  ;;  %v1477_v11 = vld [vmem:[%s3227_s0 + $0x408] sm:$0xff]  ;;  %v1442_v12 = vld [vmem:[%s3227_s0 + $0x2f0] sm:$0xff] }
  0x56   :  { %v1478_v13 = vld [vmem:[%s3227_s0 + $0x410] sm:$0xff] }
  0x58   :  { %1773 = vmatmul.mubr.f32.gmra.mrb[26].mxu0 %v57_v14  ;;  %1859 = vmatmul.mubr.f32.gmra.mrb[26].mxu1 %v1411_v15  ;;  %v1443_v14 = vld [vmem:[%s3227_s0 + $0x2f8] sm:$0xff] }
  0x59   :  { %1775 = vmatprep.mubr.f32.mxu0 %v58_v16  ;;  %1861 = vmatprep.mubr.f32.mxu1 %v1412_v17  ;;  %v1479_v15 = vld [vmem:[%s3227_s0 + $0x418] sm:$0xff]  ;;  %v1444_v16 = vld [vmem:[%s3227_s0 + $0x300] sm:$0xff] }
  0x5a   :  { %v1480_v17 = vld [vmem:[%s3227_s0 + $0x420] sm:$0xff] }
  0x5c   :  { %1776 = vmatmul.mubr.f32.gmra.mrb[28].mxu0 %v59_v18  ;;  %1862 = vmatmul.mubr.f32.gmra.mrb[28].mxu1 %v1413_v19  ;;  %v1445_v18 = vld [vmem:[%s3227_s0 + $0x308] sm:$0xff] }
  0x5d   :  { %1778 = vmatprep.mubr.f32.mxu0 %v60_v20  ;;  %1864 = vmatprep.mubr.f32.mxu1 %v1414_v21  ;;  %v1481_v19 = vld [vmem:[%s3227_s0 + $0x428] sm:$0xff]  ;;  %v1446_v20 = vld [vmem:[%s3227_s0 + $0x310] sm:$0xff] }
  0x5e   :  { %v1482_v21 = vld [vmem:[%s3227_s0 + $0x430] sm:$0xff] }
  0x60   :  { %1779 = vmatmul.mubr.f32.gmra.mrb[30].mxu0 %v61_v22  ;;  %1865 = vmatmul.mubr.f32.gmra.mrb[30].mxu1 %v1415_v23  ;;  %v1447_v22 = vld [vmem:[%s3227_s0 + $0x318] sm:$0xff] }
  0x61   :  { %1781 = vmatprep.mubr.f32.mxu0 %v62_v24  ;;  %1867 = vmatprep.mubr.f32.mxu1 %v1416_v25  ;;  %v1483_v23 = vld [vmem:[%s3227_s0 + $0x438] sm:$0xff]  ;;  %v1448_v24 = vld [vmem:[%s3227_s0 + $0x320] sm:$0xff] }
  0x62   :  { %v1484_v25 = vld [vmem:[%s3227_s0 + $0x440] sm:$0xff] }
  0x64   :  { %1782 = vmatmul.mubr.f32.gmra.mrb[32].mxu0 %v63_v26  ;;  %1868 = vmatmul.mubr.f32.gmra.mrb[32].mxu1 %v1417_v27  ;;  %v1449_v26 = vld [vmem:[%s3227_s0 + $0x328] sm:$0xff] }
  0x65   :  { %1784 = vmatprep.mubr.f32.mxu0 %v64_v28  ;;  %1870 = vmatprep.mubr.f32.mxu1 %v1418_v29  ;;  %v1485_v27 = vld [vmem:[%s3227_s0 + $0x448] sm:$0xff]  ;;  %v1450_v28 = vld [vmem:[%s3227_s0 + $0x330] sm:$0xff] }
  0x66   :  { %v1486_v29 = vld [vmem:[%s3227_s0 + $0x450] sm:$0xff] }
  0x68   :  { %1785 = vmatmul.mubr.f32.gmra.mrb[34].mxu0 %v65_v30  ;;  %1871 = vmatmul.mubr.f32.gmra.mrb[34].mxu1 %v1419_v31  ;;  %v1451_v30 = vld [vmem:[%s3227_s0 + $0x338] sm:$0xff] }
  0x69   :  { %1905 = vmatprep.mubr.f32.mxu0 %v1420_v32  ;;  %1991 = vmatprep.mubr.f32.mxu1 %v1456_v33  ;;  %v1487_v31 = vld [vmem:[%s3227_s0 + $0x458] sm:$0xff]  ;;  %v1452_v32 = vld [vmem:[%s3227_s0 + $0x340] sm:$0xff] }
  0x6a   :  { %v1488_v33 = vld [vmem:[%s3227_s0 + $0x460] sm:$0xff] }
  0x6c   :  { %1906 = vmatmul.mubr.f32.vlgmr.msra.gmra.mrb[36].mxu0 %v1421_v34  ;;  %1992 = vmatmul.mubr.f32.vlgmr.msra.gmra.mrb[36].mxu1 %v1457_v35  ;;  %v1453_v34 = vld [vmem:[%s3227_s0 + $0x348] sm:$0xff] }
  0x6d   :  { %1908 = vmatprep.mubr.f32.mxu0 %v1422_v36  ;;  %1994 = vmatprep.mubr.f32.mxu1 %v1458_v37  ;;  %v1489_v35 = vld [vmem:[%s3227_s0 + $0x468] sm:$0xff]  ;;  %v1454_v36 = vld [vmem:[%s3227_s0 + $0x350] sm:$0xff] }
  0x6e   :  { %v1490_v37 = vld [vmem:[%s3227_s0 + $0x470] sm:$0xff] }
  0x70   :  { %1909 = vmatmul.mubr.f32.gmra.mrb[38].mxu0 %v1423_v38  ;;  %1995 = vmatmul.mubr.f32.gmra.mrb[38].mxu1 %v1459_v39  ;;  %v1455_v38 = vld [vmem:[%s3227_s0 + $0x358] sm:$0xff] }
  0x71   :  { %1911 = vmatprep.mubr.f32.mxu0 %v1424_v40  ;;  %1997 = vmatprep.mubr.f32.mxu1 %v1460_v41  ;;  %v1491_v39 = vld [vmem:[%s3227_s0 + $0x478] sm:$0xff] }
  0x74   :  { %1912 = vmatmul.mubr.f32.gmra.mrb[40].mxu0 %v1425_v42  ;;  %1998 = vmatmul.mubr.f32.gmra.mrb[40].mxu1 %v1461_v43 }
  0x75   :  { %1914 = vmatprep.mubr.f32.mxu0 %v1426_v44  ;;  %2000 = vmatprep.mubr.f32.mxu1 %v1462_v45 }
  0x78   :  { %1915 = vmatmul.mubr.f32.gmra.mrb[42].mxu0 %v1427_v46  ;;  %2001 = vmatmul.mubr.f32.gmra.mrb[42].mxu1 %v1463_v47 }
  0x79   :  { %1917 = vmatprep.mubr.f32.mxu0 %v1428_v48  ;;  %2003 = vmatprep.mubr.f32.mxu1 %v1464_v49 }
  0x7c   :  { %1918 = vmatmul.mubr.f32.gmra.mrb[44].mxu0 %v1429_v50  ;;  %2004 = vmatmul.mubr.f32.gmra.mrb[44].mxu1 %v1465_v51 }
  0x7d   :  { %1920 = vmatprep.mubr.f32.mxu0 %v1430_v52  ;;  %2006 = vmatprep.mubr.f32.mxu1 %v1466_v53 }
  0x80   :  { %1921 = vmatmul.mubr.f32.gmra.mrb[46].mxu0 %v1431_v54  ;;  %2007 = vmatmul.mubr.f32.gmra.mrb[46].mxu1 %v1467_v55 }
  0x81   :  { %1923 = vmatprep.mubr.f32.mxu0 %v1432_v56  ;;  %2009 = vmatprep.mubr.f32.mxu1 %v1468_v57 }
  0x84   :  { %1924 = vmatmul.mubr.f32.gmra.mrb[48].mxu0 %v1433_v58  ;;  %2010 = vmatmul.mubr.f32.gmra.mrb[48].mxu1 %v1469_v59 }
  0x85   :  { %1926 = vmatprep.mubr.f32.mxu0 %v1434_v60  ;;  %2012 = vmatprep.mubr.f32.mxu1 %v1470_v61 }
  0x88   :  { %1927 = vmatmul.mubr.f32.gmra.mrb[50].mxu0 %v1435_v62  ;;  %2013 = vmatmul.mubr.f32.gmra.mrb[50].mxu1 %v1471_v63 }
  0x89   :  { %1929 = vmatprep.mubr.f32.mxu0 %v1436_v0  ;;  %2015 = vmatprep.mubr.f32.mxu1 %v1472_v1 }
  0x8c   :  { %1930 = vmatmul.mubr.f32.gmra.mrb[52].mxu0 %v1437_v2  ;;  %2016 = vmatmul.mubr.f32.gmra.mrb[52].mxu1 %v1473_v3 }
  0x8d   :  { %1932 = vmatprep.mubr.f32.mxu0 %v1438_v4  ;;  %2018 = vmatprep.mubr.f32.mxu1 %v1474_v5 }
  0x90   :  { %1933 = vmatmul.mubr.f32.gmra.mrb[54].mxu0 %v1439_v6  ;;  %2019 = vmatmul.mubr.f32.gmra.mrb[54].mxu1 %v1475_v7 }
  0x91   :  { %1935 = vmatprep.mubr.f32.mxu0 %v1440_v8  ;;  %2021 = vmatprep.mubr.f32.mxu1 %v1476_v9 }
  0x94   :  { %1936 = vmatmul.mubr.f32.gmra.mrb[56].mxu0 %v1441_v10  ;;  %2022 = vmatmul.mubr.f32.gmra.mrb[56].mxu1 %v1477_v11 }
  0x95   :  { %1938 = vmatprep.mubr.f32.mxu0 %v1442_v12  ;;  %2024 = vmatprep.mubr.f32.mxu1 %v1478_v13 }
  0x98   :  { %1939 = vmatmul.mubr.f32.gmra.mrb[58].mxu0 %v1443_v14  ;;  %2025 = vmatmul.mubr.f32.gmra.mrb[58].mxu1 %v1479_v15 }
  0x99   :  { %1941 = vmatprep.mubr.f32.mxu0 %v1444_v16  ;;  %2027 = vmatprep.mubr.f32.mxu1 %v1480_v17 }
  0x9c   :  { %1942 = vmatmul.mubr.f32.gmra.mrb[60].mxu0 %v1445_v18  ;;  %2028 = vmatmul.mubr.f32.gmra.mrb[60].mxu1 %v1481_v19 }
  0x9d   :  { %1944 = vmatprep.mubr.f32.mxu0 %v1446_v20  ;;  %2030 = vmatprep.mubr.f32.mxu1 %v1482_v21 }
  0xa0   :  { %1945 = vmatmul.mubr.f32.gmra.mrb[62].mxu0 %v1447_v22  ;;  %2031 = vmatmul.mubr.f32.gmra.mrb[62].mxu1 %v1483_v23 }
  0xa1   :  { %1947 = vmatprep.mubr.f32.mxu0 %v1448_v24  ;;  %2033 = vmatprep.mubr.f32.mxu1 %v1484_v25 }
  0xa4   :  { %1948 = vmatmul.mubr.f32.gmra.mrb[64].mxu0 %v1449_v26  ;;  %2034 = vmatmul.mubr.f32.gmra.mrb[64].mxu1 %v1485_v27 }
  0xa5   :  { %1950 = vmatprep.mubr.f32.mxu0 %v1450_v28  ;;  %2036 = vmatprep.mubr.f32.mxu1 %v1486_v29 }
  0xa8   :  { %1951 = vmatmul.mubr.f32.gmra.mrb[66].mxu0 %v1451_v30  ;;  %2037 = vmatmul.mubr.f32.gmra.mrb[66].mxu1 %v1487_v31 }
  0xa9   :  { %1953 = vmatprep.mubr.f32.mxu0 %v1452_v32  ;;  %2039 = vmatprep.mubr.f32.mxu1 %v1488_v33  ;;  %v2972_v32 = vld [vmem:[%s3228_s2] ss:$0 sm:$0xff] }
  0xac   :  { %1954 = vmatmul.mubr.f32.gmra.mrb[68].mxu0 %v1453_v34  ;;  %2040 = vmatmul.mubr.f32.gmra.mrb[68].mxu1 %v1489_v35 }
  0xad   :  { %1956 = vmatprep.mubr.f32.mxu0 %v1454_v36  ;;  %2042 = vmatprep.mubr.f32.mxu1 %v1490_v37 }
  0xb0   :  { %1957 = vmatmul.mubr.f32.gmra.mrb[70].mxu0 %v1455_v38  ;;  %2043 = vmatmul.mubr.f32.gmra.mrb[70].mxu1 %v1491_v39 }
  0xf7   :  { %v2753_v40 = vpop.f32.mrb[0].mxu0  ;;  %v2755_v41 = vpop.f32.mrb[0].mxu1 }
  0xf8   :  { %v2759_v43 = vpop.f32.mrb[1].mxu0  ;;  %v2761_v44 = vpop.f32.mrb[1].mxu1  ;;  %v3282_v35 = vmax.f32 %v2753_v40, %v2755_v41 }
  0xfb   :  { %v2765_v46 = vpop.f32.mrb[2].mxu0  ;;  %v2767_v47 = vpop.f32.mrb[2].mxu1 }
  0xfc   :  { %v2771_v49 = vpop.f32.mrb[3].mxu0  ;;  %v2773_v50 = vpop.f32.mrb[3].mxu1 }
  0xff   :  { %v2777_v52 = vpop.f32.mrb[4].mxu0  ;;  %v2779_v53 = vpop.f32.mrb[4].mxu1 }
 0x100   :  { %v2783_v55 = vpop.f32.mrb[5].mxu0  ;;  %v2785_v56 = vpop.f32.mrb[5].mxu1 }
 0x103   :  { %v2789_v58 = vpop.f32.mrb[6].mxu0  ;;  %v2791_v59 = vpop.f32.mrb[6].mxu1 }
 0x104   :  { %v2795_v61 = vpop.f32.mrb[7].mxu0  ;;  %v2797_v62 = vpop.f32.mrb[7].mxu1 }
 0x107   :  { %v2801_v0 = vpop.f32.mrb[8].mxu0  ;;  %v2803_v1 = vpop.f32.mrb[8].mxu1 }
 0x108   :  { %v2807_v3 = vpop.f32.mrb[9].mxu0  ;;  %v2809_v4 = vpop.f32.mrb[9].mxu1 }
 0x10b   :  { %v2813_v6 = vpop.f32.mrb[10].mxu0  ;;  %v2815_v7 = vpop.f32.mrb[10].mxu1 }
 0x10c   :  { %v2819_v9 = vpop.f32.mrb[11].mxu0  ;;  %v2821_v10 = vpop.f32.mrb[11].mxu1 }
 0x10f   :  { %v2825_v12 = vpop.f32.mrb[12].mxu0  ;;  %v2827_v13 = vpop.f32.mrb[12].mxu1 }
 0x110   :  { %v2831_v15 = vpop.f32.mrb[13].mxu0  ;;  %v2833_v16 = vpop.f32.mrb[13].mxu1 }
 0x113   :  { %v2837_v18 = vpop.f32.mrb[14].mxu0  ;;  %v2839_v19 = vpop.f32.mrb[14].mxu1 }
 0x114   :  { %v2843_v21 = vpop.f32.mrb[15].mxu0  ;;  %v2845_v22 = vpop.f32.mrb[15].mxu1 }
 0x117   :  { %v2849_v24 = vpop.f32.mrb[16].mxu0  ;;  %v2851_v25 = vpop.f32.mrb[16].mxu1 }
 0x118   :  { %v2855_v27 = vpop.f32.mrb[17].mxu0  ;;  %v2857_v28 = vpop.f32.mrb[17].mxu1 }
 0x11b   :  { %v2861_v30 = vpop.f32.mrb[18].mxu0  ;;  %v2863_v31 = vpop.f32.mrb[18].mxu1 }
 0x11c   :  { %v2867_v33 = vpop.f32.mrb[19].mxu0  ;;  %v2869_v34 = vpop.f32.mrb[19].mxu1 }
 0x11f   :  { %v2873_v36 = vpop.f32.mrb[20].mxu0  ;;  %v2875_v37 = vpop.f32.mrb[20].mxu1 }
 0x120   :  { %v2879_v39 = vpop.f32.mrb[21].mxu0  ;;  %v2881_v29 = vpop.f32.mrb[21].mxu1 }
 0x123   :  { %v2885_v26 = vpop.f32.mrb[22].mxu0  ;;  %v2887_v23 = vpop.f32.mrb[22].mxu1 }
 0x124   :  { %v2891_v20 = vpop.f32.mrb[23].mxu0  ;;  %v2893_v17 = vpop.f32.mrb[23].mxu1 }
 0x125   :  { %3256 = vst [vmem:[#allocation2_spill] sm:$0xff] %v2891_v20  ;;  %3257 = vst [vmem:[#allocation3_spill] sm:$0xff] %v2893_v17 }
 0x127   :  { %v2897_v14 = vpop.f32.mrb[24].mxu0  ;;  %v2899_v11 = vpop.f32.mrb[24].mxu1 }
 0x128   :  { %3258 = vst [vmem:[#allocation4_spill] sm:$0xff] %v2897_v14  ;;  %3259 = vst [vmem:[#allocation5_spill] sm:$0xff] %v2899_v11  ;;  %v2903_v8 = vpop.f32.mrb[25].mxu0  ;;  %v2905_v5 = vpop.f32.mrb[25].mxu1 }
 0x129   :  { %3260 = vst [vmem:[#allocation6_spill] sm:$0xff] %v2903_v8  ;;  %3261 = vst [vmem:[#allocation7_spill] sm:$0xff] %v2905_v5 }
 0x12b   :  { %v2909_v2 = vpop.f32.mrb[26].mxu0  ;;  %v2911_v63 = vpop.f32.mrb[26].mxu1 }
 0x12c   :  { %3262 = vst [vmem:[#allocation8_spill] sm:$0xff] %v2909_v2  ;;  %3263 = vst [vmem:[#allocation9_spill] sm:$0xff] %v2911_v63  ;;  %v2915_v60 = vpop.f32.mrb[27].mxu0  ;;  %v2917_v57 = vpop.f32.mrb[27].mxu1 }
 0x12d   :  { %3264 = vst [vmem:[#allocation10_spill] sm:$0xff] %v2915_v60  ;;  %3265 = vst [vmem:[#allocation11_spill] sm:$0xff] %v2917_v57 }
 0x12f   :  { %v2921_v54 = vpop.f32.mrb[28].mxu0  ;;  %v2923_v51 = vpop.f32.mrb[28].mxu1 }
 0x130   :  { %3266 = vst [vmem:[#allocation12_spill] sm:$0xff] %v2921_v54  ;;  %3267 = vst [vmem:[#allocation13_spill] sm:$0xff] %v2923_v51  ;;  %v2927_v48 = vpop.f32.mrb[29].mxu0  ;;  %v2929_v45 = vpop.f32.mrb[29].mxu1 }
 0x131   :  { %3268 = vst [vmem:[#allocation14_spill] sm:$0xff] %v2927_v48  ;;  %3269 = vst [vmem:[#allocation15_spill] sm:$0xff] %v2929_v45 }
 0x133   :  { %v2933_v42 = vpop.f32.mrb[30].mxu0  ;;  %v2935_v63 = vpop.f32.mrb[30].mxu1 }
 0x134   :  { %3270 = vst [vmem:[#allocation16_spill] sm:$0xff] %v2933_v42  ;;  %3271 = vst [vmem:[#allocation17_spill] sm:$0xff] %v2935_v63  ;;  %v2939_v57 = vpop.f32.mrb[31].mxu0  ;;  %v2941_v60 = vpop.f32.mrb[31].mxu1 }
 0x135   :  { %3272 = vst [vmem:[#allocation18_spill] sm:$0xff] %v2939_v57  ;;  %3273 = vst [vmem:[#allocation19_spill] sm:$0xff] %v2941_v60 }
 0x137   :  { %v2945_v51 = vpop.f32.mrb[32].mxu0  ;;  %v2947_v54 = vpop.f32.mrb[32].mxu1 }
 0x138   :  { %3274 = vst [vmem:[#allocation20_spill] sm:$0xff] %v2945_v51  ;;  %3275 = vst [vmem:[#allocation21_spill] sm:$0xff] %v2947_v54  ;;  %v2951_v45 = vpop.f32.mrb[33].mxu0  ;;  %v2953_v48 = vpop.f32.mrb[33].mxu1 }
 0x139   :  { %3276 = vst [vmem:[#allocation22_spill] sm:$0xff] %v2951_v45  ;;  %3277 = vst [vmem:[#allocation23_spill] sm:$0xff] %v2953_v48 }
 0x13b   :  { %v2957_v63 = vpop.f32.mrb[34].mxu0  ;;  %v2959_v42 = vpop.f32.mrb[34].mxu1 }
 0x13c   :  { %3278 = vst [vmem:[#allocation24_spill] sm:$0xff] %v2957_v63  ;;  %3279 = vst [vmem:[#allocation25_spill] sm:$0xff] %v2959_v42  ;;  %v2963_v60 = vpop.f32.mrb[35].mxu0  ;;  %v2965_v57 = vpop.f32.mrb[35].mxu1  ;;  %v3283_v63 = vmax.f32 %v2759_v43, %v2761_v44  ;;  %v3285_v43 = vmax.f32 %v2771_v49, %v2773_v50  ;;  %v3286_v50 = vmax.f32 %v2777_v52, %v2779_v53 }
 0x13d   :  { %3280 = vst [vmem:[#allocation26_spill] sm:$0xff] %v2963_v60  ;;  %3281 = vst [vmem:[#allocation27_spill] sm:$0xff] %v2965_v57 }
 0x13f   :  { %v1907_v54 = vpop.f32.mrb[36].mxu0  ;;  %v1993_v51 = vpop.f32.mrb[36].mxu1 }
 0x140   :  { %v1194_v2 = vmax.f32 %v1907_v54, %v1993_v51  ;;  %v696_v5 = vpop.f32.mrb[37].mxu0  ;;  %v978_v8 = vpop.f32.mrb[37].mxu1 }
 0x141   :  { %v1193_v48 = vmax.f32 %v696_v5, %v978_v8  ;;  %v3284_v5 = vmax.f32 %v2765_v46, %v2767_v47 }
 0x142   :  { %v1230_v42 = vmax.f32 %v3282_v35, %v1194_v2 }
 0x143   :  { %v1229_v45 = vmax.f32 %v3283_v63, %v1193_v48  ;;  %v1910_v38 = vpop.f32.mrb[38].mxu0  ;;  %v1996_v57 = vpop.f32.mrb[38].mxu1 }
 0x144   :  { %v1273_v51 = vadd.f32 %v2972_v32, %v1230_v42  ;;  %v1196_v54 = vmax.f32 %v1910_v38, %v1996_v57  ;;  %v706_v60 = vpop.f32.mrb[39].mxu0  ;;  %v988_v11 = vpop.f32.mrb[39].mxu1 }
 0x145   :  { %v1272_v14 = vadd.f32 %v2972_v32, %v1229_v45  ;;  %v1195_v17 = vmax.f32 %v706_v60, %v988_v11  ;;  %v3287_v11 = vmax.f32 %v2783_v55, %v2785_v56  ;;  %v3288_v56 = vmax.f32 %v2789_v58, %v2791_v59 }
 0x146   :  { %v1309_v20 = vmax.f32 %v1273_v51, 0.0  ;;  %v1232_v40 = vmax.f32 %v3284_v5, %v1196_v54 }
 0x147   :  { %v1308_v41 = vmax.f32 %v1272_v14, 0.0  ;;  %v1231_v44 = vmax.f32 %v3285_v43, %v1195_v17  ;;  %v1913_v48 = vpop.f32.mrb[40].mxu0  ;;  %v1999_v63 = vpop.f32.mrb[40].mxu1 }
 0x148   :  { %1345 = vst [vmem:[%s3229_s3 + $0x8] sm:$0xff] %v1309_v20  ;;  %v1275_v42 = vadd.f32 %v2972_v32, %v1232_v40  ;;  %v1198_v45 = vmax.f32 %v1913_v48, %v1999_v63  ;;  %v716_v57 = vpop.f32.mrb[41].mxu0  ;;  %v998_v60 = vpop.f32.mrb[41].mxu1 }
 0x149   :  { %1344 = vst [vmem:[%s3229_s3] sm:$0xff] %v1308_v41  ;;  %v1274_v46 = vadd.f32 %v2972_v32, %v1231_v44  ;;  %v1197_v47 = vmax.f32 %v716_v57, %v998_v60  ;;  %v3289_v41 = vmax.f32 %v2795_v61, %v2797_v62  ;;  %v3290_v62 = vmax.f32 %v2801_v0, %v2803_v1 }
 0x14a   :  { %v1311_v49 = vmax.f32 %v1275_v42, 0.0  ;;  %v1234_v2 = vmax.f32 %v3286_v50, %v1198_v45 }
 0x14b   :  { %v1310_v8 = vmax.f32 %v1274_v46, 0.0  ;;  %v1233_v14 = vmax.f32 %v3287_v11, %v1197_v47  ;;  %v1916_v17 = vpop.f32.mrb[42].mxu0  ;;  %v2002_v20 = vpop.f32.mrb[42].mxu1  ;;  %v3291_v47 = vmax.f32 %v2807_v3, %v2809_v4  ;;  %v3292_v4 = vmax.f32 %v2813_v6, %v2815_v7 }
 0x14c   :  { %1347 = vst [vmem:[%s3229_s3 + $0x18] sm:$0xff] %v1311_v49  ;;  %v1277_v35 = vadd.f32 %v2972_v32, %v1234_v2  ;;  %v1200_v38 = vmax.f32 %v1916_v17, %v2002_v20  ;;  %v726_v51 = vpop.f32.mrb[43].mxu0  ;;  %v1008_v54 = vpop.f32.mrb[43].mxu1 }
 0x14d   :  { %1346 = vst [vmem:[%s3229_s3 + $0x10] sm:$0xff] %v1310_v8  ;;  %v1276_v52 = vadd.f32 %v2972_v32, %v1233_v14  ;;  %v1199_v53 = vmax.f32 %v726_v51, %v1008_v54 }
 0x14e   :  { %v1313_v55 = vmax.f32 %v1277_v35, 0.0  ;;  %v1236_v5 = vmax.f32 %v3288_v56, %v1200_v38  ;;  %v3293_v38 = vmax.f32 %v2819_v9, %v2821_v10  ;;  %v3294_v10 = vmax.f32 %v2825_v12, %v2827_v13 }
 0x14f   :  { %v1312_v40 = vmax.f32 %v1276_v52, 0.0  ;;  %v1235_v43 = vmax.f32 %v3289_v41, %v1199_v53  ;;  %v1919_v44 = vpop.f32.mrb[44].mxu0  ;;  %v2005_v48 = vpop.f32.mrb[44].mxu1 }
 0x150   :  { %1349 = vst [vmem:[%s3229_s3 + $0x28] sm:$0xff] %v1313_v55  ;;  %v1279_v63 = vadd.f32 %v2972_v32, %v1236_v5  ;;  %v1202_v42 = vmax.f32 %v1919_v44, %v2005_v48  ;;  %v736_v45 = vpop.f32.mrb[45].mxu0  ;;  %v1018_v57 = vpop.f32.mrb[45].mxu1 }
 0x151   :  { %1348 = vst [vmem:[%s3229_s3 + $0x20] sm:$0xff] %v1312_v40  ;;  %v1278_v58 = vadd.f32 %v2972_v32, %v1235_v43  ;;  %v1201_v59 = vmax.f32 %v736_v45, %v1018_v57  ;;  %v3295_v43 = vmax.f32 %v2831_v15, %v2833_v16  ;;  %v3296_v16 = vmax.f32 %v2837_v18, %v2839_v19 }
 0x152   :  { %v1315_v61 = vmax.f32 %v1279_v63, 0.0  ;;  %v1238_v60 = vmax.f32 %v3290_v62, %v1202_v42  ;;  %v3297_v62 = vmax.f32 %v2843_v21, %v2845_v22  ;;  %v3298_v22 = vmax.f32 %v2849_v24, %v2851_v25 }
 0x153   :  { %v1314_v46 = vmax.f32 %v1278_v58, 0.0  ;;  %v1237_v49 = vmax.f32 %v3291_v47, %v1201_v59  ;;  %v1922_v50 = vpop.f32.mrb[46].mxu0  ;;  %v2008_v2 = vpop.f32.mrb[46].mxu1 }
 0x154   :  { %1351 = vst [vmem:[%s3229_s3 + $0x38] sm:$0xff] %v1315_v61  ;;  %v1281_v8 = vadd.f32 %v2972_v32, %v1238_v60  ;;  %v1204_v11 = vmax.f32 %v1922_v50, %v2008_v2  ;;  %v746_v14 = vpop.f32.mrb[47].mxu0  ;;  %v1028_v17 = vpop.f32.mrb[47].mxu1 }
 0x155   :  { %1350 = vst [vmem:[%s3229_s3 + $0x30] sm:$0xff] %v1314_v46  ;;  %v1280_v0 = vadd.f32 %v2972_v32, %v1237_v49  ;;  %v1203_v1 = vmax.f32 %v746_v14, %v1028_v17  ;;  %v3299_v17 = vmax.f32 %v2855_v27, %v2857_v28  ;;  %v3300_v28 = vmax.f32 %v2861_v30, %v2863_v31 }
 0x156   :  { %v1317_v3 = vmax.f32 %v1281_v8, 0.0  ;;  %v1240_v20 = vmax.f32 %v3292_v4, %v1204_v11 }
 0x157   :  { %v1316_v35 = vmax.f32 %v1280_v0, 0.0  ;;  %v1239_v51 = vmax.f32 %v3293_v38, %v1203_v1  ;;  %v1925_v54 = vpop.f32.mrb[48].mxu0  ;;  %v2011_v52 = vpop.f32.mrb[48].mxu1 }
 0x158   :  { %1353 = vst [vmem:[%s3229_s3 + $0x48] sm:$0xff] %v1317_v3  ;;  %v1283_v53 = vadd.f32 %v2972_v32, %v1240_v20  ;;  %v1206_v55 = vmax.f32 %v1925_v54, %v2011_v52  ;;  %v756_v56 = vpop.f32.mrb[49].mxu0  ;;  %v1038_v5 = vpop.f32.mrb[49].mxu1  ;;  %v3301_v52 = vmax.f32 %v2867_v33, %v2869_v34  ;;  %v3302_v34 = vmax.f32 %v2873_v36, %v2875_v37 }
 0x159   :  { %1352 = vst [vmem:[%s3229_s3 + $0x40] sm:$0xff] %v1316_v35  ;;  %v1282_v6 = vadd.f32 %v2972_v32, %v1239_v51  ;;  %v1205_v7 = vmax.f32 %v756_v56, %v1038_v5 }
 0x15a   :  { %v1319_v9 = vmax.f32 %v1283_v53, 0.0  ;;  %v1242_v40 = vmax.f32 %v3294_v10, %v1206_v55 }
 0x15b   :  { %v1318_v41 = vmax.f32 %v1282_v6, 0.0  ;;  %v1241_v44 = vmax.f32 %v3295_v43, %v1205_v7  ;;  %v1928_v48 = vpop.f32.mrb[50].mxu0  ;;  %v2014_v63 = vpop.f32.mrb[50].mxu1 }
 0x15c   :  { %1355 = vst [vmem:[%s3229_s3 + $0x58] sm:$0xff] %v1319_v9  ;;  %v1285_v42 = vadd.f32 %v2972_v32, %v1242_v40  ;;  %v1208_v45 = vmax.f32 %v1928_v48, %v2014_v63  ;;  %v766_v57 = vpop.f32.mrb[51].mxu0  ;;  %v1048_v58 = vpop.f32.mrb[51].mxu1 }
 0x15d   :  { %1354 = vst [vmem:[%s3229_s3 + $0x50] sm:$0xff] %v1318_v41  ;;  %v1284_v12 = vadd.f32 %v2972_v32, %v1241_v44  ;;  %v1207_v13 = vmax.f32 %v766_v57, %v1048_v58  ;;  %v3303_v41 = vmax.f32 %v2879_v39, %v2881_v29  ;;  %v3304_v39 = vmax.f32 %v2885_v26, %v2887_v23 }
 0x15e   :  { %v1321_v15 = vmax.f32 %v1285_v42, 0.0  ;;  %v1244_v59 = vmax.f32 %v3296_v16, %v1208_v45 }
 0x15f   :  { %v1320_v61 = vmax.f32 %v1284_v12, 0.0  ;;  %v1243_v60 = vmax.f32 %v3297_v62, %v1207_v13  ;;  %v1931_v46 = vpop.f32.mrb[52].mxu0  ;;  %v2017_v47 = vpop.f32.mrb[52].mxu1  ;;  %v3305_v13 = vld [vmem:[#allocation2_spill] sm:$0xff] }
 0x160   :  { %1357 = vst [vmem:[%s3229_s3 + $0x68] sm:$0xff] %v1321_v15  ;;  %v1287_v49 = vadd.f32 %v2972_v32, %v1244_v59  ;;  %v1210_v50 = vmax.f32 %v1931_v46, %v2017_v47  ;;  %v776_v2 = vpop.f32.mrb[53].mxu0  ;;  %v1058_v8 = vpop.f32.mrb[53].mxu1  ;;  %v3306_v15 = vld [vmem:[#allocation3_spill] sm:$0xff] }
 0x161   :  { %1356 = vst [vmem:[%s3229_s3 + $0x60] sm:$0xff] %v1320_v61  ;;  %v1286_v18 = vadd.f32 %v2972_v32, %v1243_v60  ;;  %v1209_v19 = vmax.f32 %v776_v2, %v1058_v8  ;;  %v3307_v16 = vmax.f32 %v3305_v13, %v3306_v15  ;;  %v3308_v2 = vld [vmem:[#allocation4_spill] sm:$0xff]  ;;  %v3309_v8 = vld [vmem:[#allocation5_spill] sm:$0xff] }
 0x162   :  { %v1323_v21 = vmax.f32 %v1287_v49, 0.0  ;;  %v1246_v11 = vmax.f32 %v3298_v22, %v1210_v50  ;;  %v3311_v22 = vld [vmem:[#allocation6_spill] sm:$0xff] }
 0x163   :  { %v1322_v14 = vmax.f32 %v1286_v18, 0.0  ;;  %v1245_v0 = vmax.f32 %v3299_v17, %v1209_v19  ;;  %v1934_v1 = vpop.f32.mrb[54].mxu0  ;;  %v2020_v3 = vpop.f32.mrb[54].mxu1  ;;  %v3310_v18 = vmax.f32 %v3308_v2, %v3309_v8 }
 0x164   :  { %1359 = vst [vmem:[%s3229_s3 + $0x78] sm:$0xff] %v1323_v21  ;;  %v1289_v4 = vadd.f32 %v2972_v32, %v1246_v11  ;;  %v1212_v20 = vmax.f32 %v1934_v1, %v2020_v3  ;;  %v786_v35 = vpop.f32.mrb[55].mxu0  ;;  %v1068_v38 = vpop.f32.mrb[55].mxu1  ;;  %v3312_v11 = vld [vmem:[#allocation7_spill] sm:$0xff] }
 0x165   :  { %1358 = vst [vmem:[%s3229_s3 + $0x70] sm:$0xff] %v1322_v14  ;;  %v1288_v24 = vadd.f32 %v2972_v32, %v1245_v0  ;;  %v1211_v25 = vmax.f32 %v786_v35, %v1068_v38  ;;  %v3313_v14 = vmax.f32 %v3311_v22, %v3312_v11 }
 0x166   :  { %v1325_v27 = vmax.f32 %v1289_v4, 0.0  ;;  %v1248_v51 = vmax.f32 %v3300_v28, %v1212_v20  ;;  %v3315_v28 = vld [vmem:[#allocation9_spill] sm:$0xff] }
 0x167   :  { %v1324_v54 = vmax.f32 %v1288_v24, 0.0  ;;  %v1247_v53 = vmax.f32 %v3301_v52, %v1211_v25  ;;  %v1937_v55 = vpop.f32.mrb[56].mxu0  ;;  %v2023_v56 = vpop.f32.mrb[56].mxu1 }
 0x168   :  { %1361 = vst [vmem:[%s3229_s3 + $0x88] sm:$0xff] %v1325_v27  ;;  %v1291_v5 = vadd.f32 %v2972_v32, %v1248_v51  ;;  %v1214_v6 = vmax.f32 %v1937_v55, %v2023_v56  ;;  %v796_v7 = vpop.f32.mrb[57].mxu0  ;;  %v1078_v9 = vpop.f32.mrb[57].mxu1  ;;  %v3314_v27 = vld [vmem:[#allocation8_spill] sm:$0xff]  ;;  %v3318_v55 = vld [vmem:[#allocation11_spill] sm:$0xff] }
 0x169   :  { %1360 = vst [vmem:[%s3229_s3 + $0x80] sm:$0xff] %v1324_v54  ;;  %v1290_v30 = vadd.f32 %v2972_v32, %v1247_v53  ;;  %v1213_v31 = vmax.f32 %v796_v7, %v1078_v9  ;;  %v3316_v51 = vmax.f32 %v3314_v27, %v3315_v28  ;;  %v3317_v53 = vld [vmem:[#allocation10_spill] sm:$0xff] }
 0x16a   :  { %v1327_v33 = vmax.f32 %v1291_v5, 0.0  ;;  %v1250_v10 = vmax.f32 %v3302_v34, %v1214_v6  ;;  %v3319_v56 = vmax.f32 %v3317_v53, %v3318_v55 }
 0x16b   :  { %v1326_v40 = vmax.f32 %v1290_v30, 0.0  ;;  %v1249_v43 = vmax.f32 %v3303_v41, %v1213_v31  ;;  %v1940_v44 = vpop.f32.mrb[58].mxu0  ;;  %v2026_v48 = vpop.f32.mrb[58].mxu1  ;;  %v3320_v41 = vld [vmem:[#allocation12_spill] sm:$0xff] }
 0x16c   :  { %1363 = vst [vmem:[%s3229_s3 + $0x98] sm:$0xff] %v1327_v33  ;;  %v1293_v63 = vadd.f32 %v2972_v32, %v1250_v10  ;;  %v1216_v42 = vmax.f32 %v1940_v44, %v2026_v48  ;;  %v806_v45 = vpop.f32.mrb[59].mxu0  ;;  %v1088_v57 = vpop.f32.mrb[59].mxu1 }
 0x16d   :  { %1362 = vst [vmem:[%s3229_s3 + $0x90] sm:$0xff] %v1326_v40  ;;  %v1292_v36 = vadd.f32 %v2972_v32, %v1249_v43  ;;  %v1215_v37 = vmax.f32 %v806_v45, %v1088_v57  ;;  %v3321_v43 = vld [vmem:[#allocation13_spill] sm:$0xff]  ;;  %v3324_v45 = vld [vmem:[#allocation15_spill] sm:$0xff] }
 0x16e   :  { %v1329_v29 = vmax.f32 %v1293_v63, 0.0  ;;  %v1252_v58 = vmax.f32 %v3304_v39, %v1216_v42  ;;  %v3322_v44 = vmax.f32 %v3320_v41, %v3321_v43  ;;  %v3323_v42 = vld [vmem:[#allocation14_spill] sm:$0xff] }
 0x16f   :  { %v1328_v12 = vmax.f32 %v1292_v36, 0.0  ;;  %v1251_v59 = vmax.f32 %v3307_v16, %v1215_v37  ;;  %v1943_v61 = vpop.f32.mrb[60].mxu0  ;;  %v2029_v62 = vpop.f32.mrb[60].mxu1  ;;  %v3325_v57 = vmax.f32 %v3323_v42, %v3324_v45 }
 0x170   :  { %1365 = vst [vmem:[%s3229_s3 + $0xa8] sm:$0xff] %v1329_v29  ;;  %v1295_v60 = vadd.f32 %v2972_v32, %v1252_v58  ;;  %v1218_v46 = vmax.f32 %v1943_v61, %v2029_v62  ;;  %v816_v47 = vpop.f32.mrb[61].mxu0  ;;  %v1098_v49 = vpop.f32.mrb[61].mxu1  ;;  %v3326_v61 = vld [vmem:[#allocation16_spill] sm:$0xff]  ;;  %v3327_v62 = vld [vmem:[#allocation17_spill] sm:$0xff] }
 0x171   :  { %1364 = vst [vmem:[%s3229_s3 + $0xa0] sm:$0xff] %v1328_v12  ;;  %v1294_v23 = vadd.f32 %v2972_v32, %v1251_v59  ;;  %v1217_v26 = vmax.f32 %v816_v47, %v1098_v49  ;;  %v3329_v49 = vld [vmem:[#allocation18_spill] sm:$0xff] }
 0x172   :  { %v1331_v50 = vmax.f32 %v1295_v60, 0.0  ;;  %v1254_v19 = vmax.f32 %v3310_v18, %v1218_v46  ;;  %v3328_v60 = vmax.f32 %v3326_v61, %v3327_v62 }
 0x173   :  { %v1330_v21 = vmax.f32 %v1294_v23, 0.0  ;;  %v1253_v17 = vmax.f32 %v3313_v14, %v1217_v26  ;;  %v1946_v0 = vpop.f32.mrb[62].mxu0  ;;  %v2032_v1 = vpop.f32.mrb[62].mxu1  ;;  %v3330_v23 = vld [vmem:[#allocation19_spill] sm:$0xff] }
 0x174   :  { %1367 = vst [vmem:[%s3229_s3 + $0xb8] sm:$0xff] %v1331_v50  ;;  %v1297_v3 = vadd.f32 %v2972_v32, %v1254_v19  ;;  %v1220_v4 = vmax.f32 %v1946_v0, %v2032_v1  ;;  %v826_v20 = vpop.f32.mrb[63].mxu0  ;;  %v1108_v35 = vpop.f32.mrb[63].mxu1  ;;  %v3331_v26 = vmax.f32 %v3329_v49, %v3330_v23  ;;  %v3332_v0 = vld [vmem:[#allocation20_spill] sm:$0xff]  ;;  %v3333_v1 = vld [vmem:[#allocation21_spill] sm:$0xff] }
 0x175   :  { %1366 = vst [vmem:[%s3229_s3 + $0xb0] sm:$0xff] %v1330_v21  ;;  %v1296_v38 = vadd.f32 %v2972_v32, %v1253_v17  ;;  %v1219_v24 = vmax.f32 %v826_v20, %v1108_v35  ;;  %v3335_v35 = vld [vmem:[#allocation22_spill] sm:$0xff] }
 0x176   :  { %v1333_v25 = vmax.f32 %v1297_v3, 0.0  ;;  %v1256_v54 = vmax.f32 %v3316_v51, %v1220_v4  ;;  %v3334_v3 = vmax.f32 %v3332_v0, %v3333_v1 }
 0x177   :  { %v1332_v52 = vmax.f32 %v1296_v38, 0.0  ;;  %v1255_v5 = vmax.f32 %v3319_v56, %v1219_v24  ;;  %v1949_v6 = vpop.f32.mrb[64].mxu0  ;;  %v2035_v7 = vpop.f32.mrb[64].mxu1  ;;  %v3336_v38 = vld [vmem:[#allocation23_spill] sm:$0xff] }
 0x178   :  { %1369 = vst [vmem:[%s3229_s3 + $0xc8] sm:$0xff] %v1333_v25  ;;  %v1299_v9 = vadd.f32 %v2972_v32, %v1256_v54  ;;  %v1222_v30 = vmax.f32 %v1949_v6, %v2035_v7  ;;  %v836_v31 = vpop.f32.mrb[65].mxu0  ;;  %v1118_v33 = vpop.f32.mrb[65].mxu1  ;;  %v3337_v24 = vmax.f32 %v3335_v35, %v3336_v38  ;;  %v3338_v6 = vld [vmem:[#allocation24_spill] sm:$0xff]  ;;  %v3339_v7 = vld [vmem:[#allocation25_spill] sm:$0xff] }
 0x179   :  { %1368 = vst [vmem:[%s3229_s3 + $0xc0] sm:$0xff] %v1332_v52  ;;  %v1298_v34 = vadd.f32 %v2972_v32, %v1255_v5  ;;  %v1221_v10 = vmax.f32 %v836_v31, %v1118_v33  ;;  %v3341_v33 = vld [vmem:[#allocation26_spill] sm:$0xff] }
 0x17a   :  { %v1335_v40 = vmax.f32 %v1299_v9, 0.0  ;;  %v1258_v48 = vmax.f32 %v3322_v44, %v1222_v30  ;;  %v3340_v9 = vmax.f32 %v3338_v6, %v3339_v7 }
 0x17b   :  { %v1334_v63 = vmax.f32 %v1298_v34, 0.0  ;;  %v1257_v36 = vmax.f32 %v3325_v57, %v1221_v10  ;;  %v1952_v37 = vpop.f32.mrb[66].mxu0  ;;  %v2038_v29 = vpop.f32.mrb[66].mxu1  ;;  %v3342_v34 = vld [vmem:[#allocation27_spill] sm:$0xff] }
 0x17c   :  { %1371 = vst [vmem:[%s3229_s3 + $0xd8] sm:$0xff] %v1335_v40  ;;  %v1301_v39 = vadd.f32 %v2972_v32, %v1258_v48  ;;  %v1224_v58 = vmax.f32 %v1952_v37, %v2038_v29  ;;  %v846_v12 = vpop.f32.mrb[67].mxu0  ;;  %v1128_v13 = vpop.f32.mrb[67].mxu1  ;;  %v3343_v10 = vmax.f32 %v3341_v33, %v3342_v34 }
 0x17d   :  { %1370 = vst [vmem:[%s3229_s3 + $0xd0] sm:$0xff] %v1334_v63  ;;  %v1300_v15 = vadd.f32 %v2972_v32, %v1257_v36  ;;  %v1223_v16 = vmax.f32 %v846_v12, %v1128_v13 }
 0x17e   :  { %v1337_v59 = vmax.f32 %v1301_v39, 0.0  ;;  %v1260_v46 = vmax.f32 %v3328_v60, %v1224_v58 }
 0x17f   :  { %v1336_v47 = vmax.f32 %v1300_v15, 0.0  ;;  %v1259_v50 = vmax.f32 %v3331_v26, %v1223_v16  ;;  %v1955_v2 = vpop.f32.mrb[68].mxu0  ;;  %v2041_v8 = vpop.f32.mrb[68].mxu1 }
 0x180   :  { %1373 = vst [vmem:[%s3229_s3 + $0xe8] sm:$0xff] %v1337_v59  ;;  %v1303_v18 = vadd.f32 %v2972_v32, %v1260_v46  ;;  %v1226_v19 = vmax.f32 %v1955_v2, %v2041_v8  ;;  %v856_v21 = vpop.f32.mrb[69].mxu0  ;;  %v1138_v22 = vpop.f32.mrb[69].mxu1 }
 0x181   :  { %1372 = vst [vmem:[%s3229_s3 + $0xe0] sm:$0xff] %v1336_v47  ;;  %v1302_v11 = vadd.f32 %v2972_v32, %v1259_v50  ;;  %v1225_v14 = vmax.f32 %v856_v21, %v1138_v22 }
 0x182   :  { %v1339_v17 = vmax.f32 %v1303_v18, 0.0  ;;  %v1262_v4 = vmax.f32 %v3334_v3, %v1226_v19 }
 0x183   :  { %v1338_v20 = vmax.f32 %v1302_v11, 0.0  ;;  %v1261_v25 = vmax.f32 %v3337_v24, %v1225_v14  ;;  %v1958_v27 = vpop.f32.mrb[70].mxu0  ;;  %v2044_v28 = vpop.f32.mrb[70].mxu1 }
 0x184   :  { %1375 = vst [vmem:[%s3229_s3 + $0xf8] sm:$0xff] %v1339_v17  ;;  %v1305_v51 = vadd.f32 %v2972_v32, %v1262_v4  ;;  %v1228_v54 = vmax.f32 %v1958_v27, %v2044_v28  ;;  %v866_v52 = vpop.f32.mrb[71].mxu0  ;;  %v1148_v53 = vpop.f32.mrb[71].mxu1 }
 0x185   :  { %1374 = vst [vmem:[%s3229_s3 + $0xf0] sm:$0xff] %v1338_v20  ;;  %v1304_v55 = vadd.f32 %v2972_v32, %v1261_v25  ;;  %v1227_v56 = vmax.f32 %v866_v52, %v1148_v53 }
 0x186   :  { %v1341_v5 = vmax.f32 %v1305_v51, 0.0  ;;  %v1264_v30 = vmax.f32 %v3340_v9, %v1228_v54 }
 0x187   :  { %v1340_v31 = vmax.f32 %v1304_v55, 0.0  ;;  %v1263_v40 = vmax.f32 %v3343_v10, %v1227_v56 }
 0x188   :  { %1377 = vst [vmem:[%s3229_s3 + $0x108] sm:$0xff] %v1341_v5  ;;  %v1307_v41 = vadd.f32 %v2972_v32, %v1264_v30 }
 0x189   :  { %1376 = vst [vmem:[%s3229_s3 + $0x100] sm:$0xff] %v1340_v31  ;;  %v1306_v43 = vadd.f32 %v2972_v32, %v1263_v40 }
 0x18a   :  { %v1343_v44 = vmax.f32 %v1307_v41, 0.0 }
 0x18b   :  { %v1342_v48 = vmax.f32 %v1306_v43, 0.0 }
 0x18c   :  { %1379 = vst [vmem:[%s3229_s3 + $0x118] sm:$0xff] %v1343_v44 }
 0x18d   :  { %1378 = vst [vmem:[%s3229_s3 + $0x110] sm:$0xff] %v1342_v48 }

// kernel: cnn_forward.4
= control target key start
LH: loop header
LB: loop body
LE: loop exit
PB: predicated region body
PF: predicated region fallthrough
CT: control target
= control target key end

     0   :  { %v939_v0 = vmov 0.0|0.0   ;;  %vm940_vm0 = vmmov 0   ;;  %v941_v6 = vmov 0.0   ;;  %s1260_s1 = inlined_call_operand.vmem [shape: f32[128,128], index: 1, kind: input, shape index: {}]   ;;  %s1261_s0 = inlined_call_operand.vmem [shape: f32[4,56,128], index: 0, kind: input, shape index: {}]   ;;  %s1262_s2 = inlined_call_operand.vmem [shape: f32[1,128], index: 2, kind: input, shape index: {}]   ;;  %s1263_s3 = inlined_call_operand.vmem [shape: f32[56,128], index: 3, kind: output, shape index: {}]  }
   0x1   :  { %840 = vmatprep.subr.bf16.mxu0 %v939_v0  ;;  %864 = vmatprep.subr.bf16.mxu1 %v939_v0  ;;  %v14_v1 = vld [vmem:[%s1260_s1] sm:$0xff]  ;;  %v15_v2 = vld [vmem:[%s1260_s1 + $0x8] sm:$0xff]  ;;  %v16_v3 = vld [vmem:[%s1260_s1 + $0x10] sm:$0xff] }
   0x2   :  { %v841_v4 = vpack.c.bf16 %v15_v2, %v14_v1  ;;  %v17_v5 = vld [vmem:[%s1260_s1 + $0x18] sm:$0xff]  ;;  %660 = vmatprep.mubr.msk.f32.mxu0 %vm940_vm0, %v941_v6  ;;  %713 = vmatprep.mubr.msk.f32.mxu1 %vm940_vm0, %v941_v6  ;;  %v18_v8 = vld [vmem:[%s1260_s1 + $0x20] sm:$0xff]  ;;  %v19_v9 = vld [vmem:[%s1260_s1 + $0x28] sm:$0xff] }
   0x3   :  { %v980_v7 = vpack.c.bf16 %v17_v5, %v16_v3  ;;  %v992_v10 = vpack.c.bf16 %v19_v9, %v18_v8  ;;  %v20_v11 = vld [vmem:[%s1260_s1 + $0x30] sm:$0xff]  ;;  %v21_v12 = vld [vmem:[%s1260_s1 + $0x38] sm:$0xff]  ;;  %v22_v14 = vld [vmem:[%s1260_s1 + $0x40] sm:$0xff] }
   0x4   :  { %842 = vmatpush3.bf16.msra.mxu0 %v841_v4  ;;  %866 = vmatpush3.bf16.msra.mxu1 %v841_v4  ;;  %v1004_v13 = vpack.c.bf16 %v21_v12, %v20_v11  ;;  %v23_v15 = vld [vmem:[%s1260_s1 + $0x48] sm:$0xff]  ;;  %v24_v17 = vld [vmem:[%s1260_s1 + $0x50] sm:$0xff]  ;;  %v25_v18 = vld [vmem:[%s1260_s1 + $0x58] sm:$0xff] }
   0x5   :  { %843 = vmatprep.subr.bf16.mxu0 %v939_v0  ;;  %867 = vmatprep.subr.bf16.mxu1 %v939_v0  ;;  %v1016_v16 = vpack.c.bf16 %v23_v15, %v22_v14  ;;  %v1028_v19 = vpack.c.bf16 %v25_v18, %v24_v17  ;;  %v26_v20 = vld [vmem:[%s1260_s1 + $0x60] sm:$0xff]  ;;  %v27_v21 = vld [vmem:[%s1260_s1 + $0x68] sm:$0xff]  ;;  %v28_v23 = vld [vmem:[%s1260_s1 + $0x70] sm:$0xff] }
   0x6   :  { %v1040_v22 = vpack.c.bf16 %v27_v21, %v26_v20  ;;  %v29_v24 = vld [vmem:[%s1260_s1 + $0x78] sm:$0xff]  ;;  %v30_v26 = vld [vmem:[%s1261_s0] sm:$0xff]  ;;  %v31_v28 = vld [vmem:[%s1261_s0 + $0x8] sm:$0xff] }
   0x7   :  { %v1052_v25 = vpack.c.bf16 %v29_v24, %v28_v23  ;;  %v514_v27 = vld [vmem:[%s1261_s0 + $0x38] sm:$0xff]  ;;  %v515_v29 = vld [vmem:[%s1261_s0 + $0x40] sm:$0xff]  ;;  %v32_v30 = vld [vmem:[%s1261_s0 + $0x10] sm:$0xff] }
   0x8   :  { %845 = vmatpush3.bf16.msra.mxu0 %v980_v7  ;;  %869 = vmatpush3.bf16.msra.mxu1 %v980_v7  ;;  %v516_v31 = vld [vmem:[%s1261_s0 + $0x48] sm:$0xff]  ;;  %v33_v32 = vld [vmem:[%s1261_s0 + $0x18] sm:$0xff]  ;;  %v517_v33 = vld [vmem:[%s1261_s0 + $0x50] sm:$0xff] }
   0x9   :  { %846 = vmatprep.subr.bf16.mxu0 %v939_v0  ;;  %870 = vmatprep.subr.bf16.mxu1 %v939_v0  ;;  %v34_v34 = vld [vmem:[%s1261_s0 + $0x20] sm:$0xff]  ;;  %v518_v35 = vld [vmem:[%s1261_s0 + $0x58] sm:$0xff]  ;;  %v35_v36 = vld [vmem:[%s1261_s0 + $0x28] sm:$0xff] }
   0xa   :  { %v519_v37 = vld [vmem:[%s1261_s0 + $0x60] sm:$0xff]  ;;  %v36_v38 = vld [vmem:[%s1261_s0 + $0x30] sm:$0xff]  ;;  %v520_v39 = vld [vmem:[%s1261_s0 + $0x68] sm:$0xff] }
   0xb   :  { %v521_v40 = vld [vmem:[%s1261_s0 + $0x70] sm:$0xff]  ;;  %v528_v41 = vld [vmem:[%s1261_s0 + $0xa8] sm:$0xff]  ;;  %v522_v42 = vld [vmem:[%s1261_s0 + $0x78] sm:$0xff] }
   0xc   :  { %848 = vmatpush3.bf16.msra.mxu0 %v992_v10  ;;  %872 = vmatpush3.bf16.msra.mxu1 %v992_v10  ;;  %v529_v43 = vld [vmem:[%s1261_s0 + $0xb0] sm:$0xff]  ;;  %v523_v44 = vld [vmem:[%s1261_s0 + $0x80] sm:$0xff]  ;;  %v530_v45 = vld [vmem:[%s1261_s0 + $0xb8] sm:$0xff] }
   0xd   :  { %849 = vmatprep.subr.bf16.mxu0 %v939_v0  ;;  %873 = vmatprep.subr.bf16.mxu1 %v939_v0  ;;  %v524_v46 = vld [vmem:[%s1261_s0 + $0x88] sm:$0xff]  ;;  %v531_v47 = vld [vmem:[%s1261_s0 + $0xc0] sm:$0xff]  ;;  %v525_v48 = vld [vmem:[%s1261_s0 + $0x90] sm:$0xff] }
   0xe   :  { %v532_v49 = vld [vmem:[%s1261_s0 + $0xc8] sm:$0xff]  ;;  %v526_v50 = vld [vmem:[%s1261_s0 + $0x98] sm:$0xff]  ;;  %v533_v51 = vld [vmem:[%s1261_s0 + $0xd0] sm:$0xff] }
   0xf   :  { %v527_v52 = vld [vmem:[%s1261_s0 + $0xa0] sm:$0xff]  ;;  %v534_v53 = vld [vmem:[%s1261_s0 + $0xd8] sm:$0xff] }
  0x10   :  { %851 = vmatpush3.bf16.msra.mxu0 %v1004_v13  ;;  %875 = vmatpush3.bf16.msra.mxu1 %v1004_v13 }
  0x11   :  { %852 = vmatprep.subr.bf16.mxu0 %v939_v0  ;;  %876 = vmatprep.subr.bf16.mxu1 %v939_v0 }
  0x14   :  { %854 = vmatpush3.bf16.msra.mxu0 %v1016_v16  ;;  %878 = vmatpush3.bf16.msra.mxu1 %v1016_v16 }
  0x15   :  { %855 = vmatprep.subr.bf16.mxu0 %v939_v0  ;;  %879 = vmatprep.subr.bf16.mxu1 %v939_v0 }
  0x18   :  { %857 = vmatpush3.bf16.msra.mxu0 %v1028_v19  ;;  %881 = vmatpush3.bf16.msra.mxu1 %v1028_v19 }
  0x19   :  { %858 = vmatprep.subr.bf16.mxu0 %v939_v0  ;;  %882 = vmatprep.subr.bf16.mxu1 %v939_v0 }
  0x1c   :  { %860 = vmatpush3.bf16.msra.mxu0 %v1040_v22  ;;  %884 = vmatpush3.bf16.msra.mxu1 %v1040_v22 }
  0x1d   :  { %861 = vmatprep.subr.bf16.mxu0 %v939_v0  ;;  %885 = vmatprep.subr.bf16.mxu1 %v939_v0 }
  0x20   :  { %863 = vmatpush3.bf16.msra.mxu0 %v1052_v25  ;;  %887 = vmatpush3.bf16.msra.mxu1 %v1052_v25 }
  0x21   :  { %888 = vmatprep.subr.bf16.mxu0 %v939_v0  ;;  %912 = vmatprep.subr.bf16.mxu1 %v939_v0 }
  0x23   :  { %661 = vmatmul.mubr.f32.vlgmr.msra.gmra.mrb[0].mxu0 %v30_v26  ;;  %714 = vmatmul.mubr.f32.vlgmr.msra.gmra.mrb[0].mxu1 %v514_v27 }
  0x24   :  { %890 = vmatpush3.bf16.msra.mxu0 %v841_v4  ;;  %914 = vmatpush3.bf16.msra.mxu1 %v841_v4 }
  0x25   :  { %891 = vmatprep.subr.bf16.mxu0 %v939_v0  ;;  %915 = vmatprep.subr.bf16.mxu1 %v939_v0 }
  0x26   :  { %663 = vmatprep.mubr.msk.f32.mxu0 %vm940_vm0, %v941_v6  ;;  %716 = vmatprep.mubr.msk.f32.mxu1 %vm940_vm0, %v941_v6 }
  0x27   :  { %664 = vmatmul.mubr.f32.gmra.mrb[2].mxu0 %v31_v28  ;;  %717 = vmatmul.mubr.f32.gmra.mrb[2].mxu1 %v515_v29 }
  0x28   :  { %893 = vmatpush3.bf16.msra.mxu0 %v980_v7  ;;  %917 = vmatpush3.bf16.msra.mxu1 %v980_v7 }
  0x29   :  { %894 = vmatprep.subr.bf16.mxu0 %v939_v0  ;;  %918 = vmatprep.subr.bf16.mxu1 %v939_v0 }
  0x2a   :  { %666 = vmatprep.mubr.msk.f32.mxu0 %vm940_vm0, %v941_v6  ;;  %719 = vmatprep.mubr.msk.f32.mxu1 %vm940_vm0, %v941_v6 }
  0x2b   :  { %667 = vmatmul.mubr.f32.gmra.mrb[4].mxu0 %v32_v30  ;;  %720 = vmatmul.mubr.f32.gmra.mrb[4].mxu1 %v516_v31  ;;  %v535_v30 = vld [vmem:[%s1262_s2] ss:$0 sm:$0xff] }
  0x2c   :  { %896 = vmatpush3.bf16.msra.mxu0 %v992_v10  ;;  %920 = vmatpush3.bf16.msra.mxu1 %v992_v10 }
  0x2d   :  { %897 = vmatprep.subr.bf16.mxu0 %v939_v0  ;;  %921 = vmatprep.subr.bf16.mxu1 %v939_v0 }
  0x2e   :  { %669 = vmatprep.mubr.msk.f32.mxu0 %vm940_vm0, %v941_v6  ;;  %722 = vmatprep.mubr.msk.f32.mxu1 %vm940_vm0, %v941_v6 }
  0x2f   :  { %670 = vmatmul.mubr.f32.gmra.mrb[6].mxu0 %v33_v32  ;;  %723 = vmatmul.mubr.f32.gmra.mrb[6].mxu1 %v517_v33 }
  0x30   :  { %899 = vmatpush3.bf16.msra.mxu0 %v1004_v13  ;;  %923 = vmatpush3.bf16.msra.mxu1 %v1004_v13 }
  0x31   :  { %900 = vmatprep.subr.bf16.mxu0 %v939_v0  ;;  %924 = vmatprep.subr.bf16.mxu1 %v939_v0 }
  0x32   :  { %672 = vmatprep.mubr.msk.f32.mxu0 %vm940_vm0, %v941_v6  ;;  %725 = vmatprep.mubr.msk.f32.mxu1 %vm940_vm0, %v941_v6 }
  0x33   :  { %673 = vmatmul.mubr.f32.gmra.mrb[8].mxu0 %v34_v34  ;;  %726 = vmatmul.mubr.f32.gmra.mrb[8].mxu1 %v518_v35 }
  0x34   :  { %902 = vmatpush3.bf16.msra.mxu0 %v1016_v16  ;;  %926 = vmatpush3.bf16.msra.mxu1 %v1016_v16 }
  0x35   :  { %903 = vmatprep.subr.bf16.mxu0 %v939_v0  ;;  %927 = vmatprep.subr.bf16.mxu1 %v939_v0 }
  0x36   :  { %675 = vmatprep.mubr.msk.f32.mxu0 %vm940_vm0, %v941_v6  ;;  %728 = vmatprep.mubr.msk.f32.mxu1 %vm940_vm0, %v941_v6 }
  0x37   :  { %676 = vmatmul.mubr.f32.gmra.mrb[10].mxu0 %v35_v36  ;;  %729 = vmatmul.mubr.f32.gmra.mrb[10].mxu1 %v519_v37 }
  0x38   :  { %905 = vmatpush3.bf16.msra.mxu0 %v1028_v19  ;;  %929 = vmatpush3.bf16.msra.mxu1 %v1028_v19 }
  0x39   :  { %906 = vmatprep.subr.bf16.mxu0 %v939_v0  ;;  %930 = vmatprep.subr.bf16.mxu1 %v939_v0 }
  0x3a   :  { %678 = vmatprep.mubr.msk.f32.mxu0 %vm940_vm0, %v941_v6  ;;  %731 = vmatprep.mubr.msk.f32.mxu1 %vm940_vm0, %v941_v6 }
  0x3b   :  { %679 = vmatmul.mubr.f32.gmra.mrb[12].mxu0 %v36_v38  ;;  %732 = vmatmul.mubr.f32.gmra.mrb[12].mxu1 %v520_v39 }
  0x3c   :  { %908 = vmatpush3.bf16.msra.mxu0 %v1040_v22  ;;  %932 = vmatpush3.bf16.msra.mxu1 %v1040_v22 }
  0x3d   :  { %909 = vmatprep.subr.bf16.mxu0 %v939_v0  ;;  %933 = vmatprep.subr.bf16.mxu1 %v939_v0 }
  0x3e   :  { %766 = vmatprep.mubr.msk.f32.mxu0 %vm940_vm0, %v941_v6  ;;  %819 = vmatprep.mubr.msk.f32.mxu1 %vm940_vm0, %v941_v6 }
  0x40   :  { %911 = vmatpush3.bf16.msra.mxu0 %v1052_v25  ;;  %935 = vmatpush3.bf16.msra.mxu1 %v1052_v25 }
  0x43   :  { %767 = vmatmul.mubr.f32.vlgmr.msra.gmra.mrb[14].mxu0 %v521_v40  ;;  %820 = vmatmul.mubr.f32.vlgmr.msra.gmra.mrb[14].mxu1 %v528_v41 }
  0x44   :  { %769 = vmatprep.mubr.msk.f32.mxu0 %vm940_vm0, %v941_v6  ;;  %822 = vmatprep.mubr.msk.f32.mxu1 %vm940_vm0, %v941_v6 }
  0x47   :  { %770 = vmatmul.mubr.f32.gmra.mrb[16].mxu0 %v522_v42  ;;  %823 = vmatmul.mubr.f32.gmra.mrb[16].mxu1 %v529_v43 }
  0x48   :  { %772 = vmatprep.mubr.msk.f32.mxu0 %vm940_vm0, %v941_v6  ;;  %825 = vmatprep.mubr.msk.f32.mxu1 %vm940_vm0, %v941_v6 }
  0x4b   :  { %773 = vmatmul.mubr.f32.gmra.mrb[18].mxu0 %v523_v44  ;;  %826 = vmatmul.mubr.f32.gmra.mrb[18].mxu1 %v530_v45 }
  0x4c   :  { %775 = vmatprep.mubr.msk.f32.mxu0 %vm940_vm0, %v941_v6  ;;  %828 = vmatprep.mubr.msk.f32.mxu1 %vm940_vm0, %v941_v6 }
  0x4f   :  { %776 = vmatmul.mubr.f32.gmra.mrb[20].mxu0 %v524_v46  ;;  %829 = vmatmul.mubr.f32.gmra.mrb[20].mxu1 %v531_v47 }
  0x50   :  { %778 = vmatprep.mubr.msk.f32.mxu0 %vm940_vm0, %v941_v6  ;;  %831 = vmatprep.mubr.msk.f32.mxu1 %vm940_vm0, %v941_v6 }
  0x53   :  { %779 = vmatmul.mubr.f32.gmra.mrb[22].mxu0 %v525_v48  ;;  %832 = vmatmul.mubr.f32.gmra.mrb[22].mxu1 %v532_v49 }
  0x54   :  { %781 = vmatprep.mubr.msk.f32.mxu0 %vm940_vm0, %v941_v6  ;;  %834 = vmatprep.mubr.msk.f32.mxu1 %vm940_vm0, %v941_v6 }
  0x57   :  { %782 = vmatmul.mubr.f32.gmra.mrb[24].mxu0 %v526_v50  ;;  %835 = vmatmul.mubr.f32.gmra.mrb[24].mxu1 %v533_v51 }
  0x58   :  { %784 = vmatprep.mubr.msk.f32.mxu0 %vm940_vm0, %v941_v6  ;;  %837 = vmatprep.mubr.msk.f32.mxu1 %vm940_vm0, %v941_v6 }
  0x5b   :  { %785 = vmatmul.mubr.f32.gmra.mrb[26].mxu0 %v527_v52  ;;  %838 = vmatmul.mubr.f32.gmra.mrb[26].mxu1 %v534_v53 }
  0xf6   :  { %v103_v54 = vpop.f32.mrb[0].mxu0  ;;  %v211_v55 = vpop.f32.mrb[0].mxu1 }
  0xf7   :  { %v461_v56 = vmax.f32 %v103_v54, %v211_v55  ;;  %v662_v57 = vpop.f32.mrb[1].mxu0  ;;  %v715_v58 = vpop.f32.mrb[1].mxu1 }
  0xfa   :  { %v108_v59 = vpop.f32.mrb[2].mxu0  ;;  %v216_v60 = vpop.f32.mrb[2].mxu1 }
  0xfb   :  { %v462_v61 = vmax.f32 %v108_v59, %v216_v60  ;;  %v665_v62 = vpop.f32.mrb[3].mxu0  ;;  %v718_v63 = vpop.f32.mrb[3].mxu1 }
  0xfe   :  { %v113_v0 = vpop.f32.mrb[4].mxu0  ;;  %v221_v1 = vpop.f32.mrb[4].mxu1 }
  0xff   :  { %v463_v2 = vmax.f32 %v113_v0, %v221_v1  ;;  %v668_v3 = vpop.f32.mrb[5].mxu0  ;;  %v721_v4 = vpop.f32.mrb[5].mxu1 }
 0x102   :  { %v118_v5 = vpop.f32.mrb[6].mxu0  ;;  %v226_v6 = vpop.f32.mrb[6].mxu1 }
 0x103   :  { %v464_v7 = vmax.f32 %v118_v5, %v226_v6  ;;  %v671_v8 = vpop.f32.mrb[7].mxu0  ;;  %v724_v9 = vpop.f32.mrb[7].mxu1 }
 0x106   :  { %v123_v10 = vpop.f32.mrb[8].mxu0  ;;  %v231_v11 = vpop.f32.mrb[8].mxu1 }
 0x107   :  { %v465_v12 = vmax.f32 %v123_v10, %v231_v11  ;;  %v674_v13 = vpop.f32.mrb[9].mxu0  ;;  %v727_v14 = vpop.f32.mrb[9].mxu1 }
 0x10a   :  { %v1224_v15 = vpop.f32.mrb[10].mxu0  ;;  %v236_v16 = vpop.f32.mrb[10].mxu1 }
 0x10b   :  { %v466_v17 = vmax.f32 %v1224_v15, %v236_v16  ;;  %v677_v18 = vpop.f32.mrb[11].mxu0  ;;  %v730_v19 = vpop.f32.mrb[11].mxu1 }
 0x10e   :  { %v1227_v20 = vpop.f32.mrb[12].mxu0  ;;  %v1229_v21 = vpop.f32.mrb[12].mxu1 }
 0x10f   :  { %v467_v22 = vmax.f32 %v1227_v20, %v1229_v21  ;;  %v680_v23 = vpop.f32.mrb[13].mxu0  ;;  %v733_v24 = vpop.f32.mrb[13].mxu1 }
 0x116   :  { %v319_v25 = vpop.f32.mrb[14].mxu0  ;;  %v427_v26 = vpop.f32.mrb[14].mxu1 }
 0x117   :  { %v468_v27 = vmax.f32 %v319_v25, %v427_v26  ;;  %v768_v28 = vpop.f32.mrb[15].mxu0  ;;  %v821_v29 = vpop.f32.mrb[15].mxu1 }
 0x119   :  { %v475_v31 = vmax.f32 %v461_v56, %v468_v27 }
 0x11a   :  { %v324_v32 = vpop.f32.mrb[16].mxu0  ;;  %v432_v33 = vpop.f32.mrb[16].mxu1 }
 0x11b   :  { %v489_v34 = vadd.f32 %v535_v30, %v475_v31  ;;  %v469_v35 = vmax.f32 %v324_v32, %v432_v33  ;;  %v771_v36 = vpop.f32.mrb[17].mxu0  ;;  %v824_v37 = vpop.f32.mrb[17].mxu1 }
 0x11d   :  { %v496_v38 = vmax.f32 %v489_v34, 0.0  ;;  %v476_v39 = vmax.f32 %v462_v61, %v469_v35 }
 0x11e   :  { %v329_v40 = vpop.f32.mrb[18].mxu0  ;;  %v437_v41 = vpop.f32.mrb[18].mxu1 }
 0x11f   :  { %503 = vst [vmem:[%s1263_s3] sm:$0xff] %v496_v38  ;;  %v490_v42 = vadd.f32 %v535_v30, %v476_v39  ;;  %v470_v43 = vmax.f32 %v329_v40, %v437_v41  ;;  %v774_v44 = vpop.f32.mrb[19].mxu0  ;;  %v827_v45 = vpop.f32.mrb[19].mxu1 }
 0x121   :  { %v497_v46 = vmax.f32 %v490_v42, 0.0  ;;  %v477_v47 = vmax.f32 %v463_v2, %v470_v43 }
 0x122   :  { %v334_v48 = vpop.f32.mrb[20].mxu0  ;;  %v442_v49 = vpop.f32.mrb[20].mxu1 }
 0x123   :  { %504 = vst [vmem:[%s1263_s3 + $0x8] sm:$0xff] %v497_v46  ;;  %v491_v50 = vadd.f32 %v535_v30, %v477_v47  ;;  %v471_v51 = vmax.f32 %v334_v48, %v442_v49  ;;  %v777_v52 = vpop.f32.mrb[21].mxu0  ;;  %v830_v53 = vpop.f32.mrb[21].mxu1 }
 0x125   :  { %v498_v54 = vmax.f32 %v491_v50, 0.0  ;;  %v478_v55 = vmax.f32 %v464_v7, %v471_v51 }
 0x126   :  { %v339_v56 = vpop.f32.mrb[22].mxu0  ;;  %v447_v57 = vpop.f32.mrb[22].mxu1 }
 0x127   :  { %505 = vst [vmem:[%s1263_s3 + $0x10] sm:$0xff] %v498_v54  ;;  %v492_v58 = vadd.f32 %v535_v30, %v478_v55  ;;  %v472_v59 = vmax.f32 %v339_v56, %v447_v57  ;;  %v780_v60 = vpop.f32.mrb[23].mxu0  ;;  %v833_v61 = vpop.f32.mrb[23].mxu1 }
 0x129   :  { %v499_v62 = vmax.f32 %v492_v58, 0.0  ;;  %v479_v63 = vmax.f32 %v465_v12, %v472_v59 }
 0x12a   :  { %v344_v0 = vpop.f32.mrb[24].mxu0  ;;  %v452_v1 = vpop.f32.mrb[24].mxu1 }
 0x12b   :  { %506 = vst [vmem:[%s1263_s3 + $0x18] sm:$0xff] %v499_v62  ;;  %v493_v2 = vadd.f32 %v535_v30, %v479_v63  ;;  %v473_v3 = vmax.f32 %v344_v0, %v452_v1  ;;  %v783_v4 = vpop.f32.mrb[25].mxu0  ;;  %v836_v5 = vpop.f32.mrb[25].mxu1 }
 0x12d   :  { %v500_v6 = vmax.f32 %v493_v2, 0.0  ;;  %v480_v7 = vmax.f32 %v466_v17, %v473_v3 }
 0x12e   :  { %v349_v8 = vpop.f32.mrb[26].mxu0  ;;  %v457_v9 = vpop.f32.mrb[26].mxu1 }
 0x12f   :  { %507 = vst [vmem:[%s1263_s3 + $0x20] sm:$0xff] %v500_v6  ;;  %v494_v10 = vadd.f32 %v535_v30, %v480_v7  ;;  %v474_v11 = vmax.f32 %v349_v8, %v457_v9  ;;  %v786_v12 = vpop.f32.mrb[27].mxu0  ;;  %v839_v13 = vpop.f32.mrb[27].mxu1 }
 0x131   :  { %v501_v14 = vmax.f32 %v494_v10, 0.0  ;;  %v481_v15 = vmax.f32 %v467_v22, %v474_v11 }
 0x133   :  { %508 = vst [vmem:[%s1263_s3 + $0x28] sm:$0xff] %v501_v14  ;;  %v495_v16 = vadd.f32 %v535_v30, %v481_v15 }
 0x135   :  { %v502_v17 = vmax.f32 %v495_v16, 0.0 }
 0x137   :  { %509 = vst [vmem:[%s1263_s3 + $0x30] sm:$0xff] %v502_v17 }

// kernel: cnn_forward.5
= control target key start
LH: loop header
LB: loop body
LE: loop exit
PB: predicated region body
PF: predicated region fallthrough
CT: control target
= control target key end

     0   :  { %s599_s1 = inlined_call_operand.vmem [shape: f32[512,128], index: 1, kind: input, shape index: {}]   ;;  %s600_s0 = inlined_call_operand.vmem [shape: f32[8,512], index: 0, kind: input, shape index: {}]   ;;  %s601_s2 = inlined_call_operand.vmem [shape: f32[1,128], index: 2, kind: input, shape index: {}]   ;;  %s602_s3 = inlined_call_operand.vmem [shape: f32[8,128], index: 3, kind: output, shape index: {}]  }
   0x1   :  { %v34_v0 = vld [vmem:[%s599_s1 + $0x80] sm:$0xff]  ;;  %v35_v1 = vld [vmem:[%s599_s1 + $0x88] sm:$0xff]  ;;  %v36_v11 = vld [vmem:[%s599_s1 + $0x90] sm:$0xff] }
   0x2   :  { %v18_v2 = vld [vmem:[%s599_s1] sm:$0xff]  ;;  %v305_v3 = vpack.c.bf16 %v35_v1, %v34_v0  ;;  %v19_v4 = vld [vmem:[%s599_s1 + $0x8] sm:$0xff]  ;;  %v37_v13 = vld [vmem:[%s599_s1 + $0x98] sm:$0xff] }
   0x3   :  { %v66_v5 = vld [vmem:[%s599_s1 + $0x180] sm:$0xff]  ;;  %v67_v6 = vld [vmem:[%s599_s1 + $0x188] sm:$0xff]  ;;  %v307_v7 = vpack.c.bf16 %v19_v4, %v18_v2  ;;  %v20_v14 = vld [vmem:[%s599_s1 + $0x10] sm:$0xff]  ;;  %v309_v16 = vpack.c.bf16 %v37_v13, %v36_v11 }
   0x4   :  { %v337_v8 = vpack.c.bf16 %v67_v6, %v66_v5  ;;  %v50_v9 = vld [vmem:[%s599_s1 + $0x100] sm:$0xff]  ;;  %v51_v10 = vld [vmem:[%s599_s1 + $0x108] sm:$0xff]  ;;  %306 = vmatprep.subr.bf16.mxu0 %v305_v3  ;;  %v21_v15 = vld [vmem:[%s599_s1 + $0x18] sm:$0xff] }
   0x5   :  { %v339_v12 = vpack.c.bf16 %v51_v10, %v50_v9  ;;  %308 = vmatpush3.bf16.msra.mxu0 %v307_v7  ;;  %v311_v17 = vpack.c.bf16 %v21_v15, %v20_v14  ;;  %v68_v18 = vld [vmem:[%s599_s1 + $0x190] sm:$0xff]  ;;  %v69_v19 = vld [vmem:[%s599_s1 + $0x198] sm:$0xff]  ;;  %v38_v23 = vld [vmem:[%s599_s1 + $0xa0] sm:$0xff] }
   0x6   :  { %338 = vmatprep.subr.bf16.mxu1 %v337_v8  ;;  %v52_v20 = vld [vmem:[%s599_s1 + $0x110] sm:$0xff]  ;;  %v341_v21 = vpack.c.bf16 %v69_v19, %v68_v18  ;;  %v53_v22 = vld [vmem:[%s599_s1 + $0x118] sm:$0xff]  ;;  %v39_v24 = vld [vmem:[%s599_s1 + $0xa8] sm:$0xff]  ;;  %310 = vmatprep.subr.bf16.mxu0 %v309_v16 }
   0x7   :  { %340 = vmatpush3.bf16.msra.mxu1 %v339_v12  ;;  %v343_v25 = vpack.c.bf16 %v53_v22, %v52_v20  ;;  %v313_v26 = vpack.c.bf16 %v39_v24, %v38_v23  ;;  %v22_v27 = vld [vmem:[%s599_s1 + $0x20] sm:$0xff]  ;;  %v23_v28 = vld [vmem:[%s599_s1 + $0x28] sm:$0xff]  ;;  %v40_v35 = vld [vmem:[%s599_s1 + $0xb0] sm:$0xff] }
   0x8   :  { %v70_v29 = vld [vmem:[%s599_s1 + $0x1a0] sm:$0xff]  ;;  %342 = vmatprep.subr.bf16.mxu1 %v341_v21  ;;  %v71_v30 = vld [vmem:[%s599_s1 + $0x1a8] sm:$0xff]  ;;  %v315_v33 = vpack.c.bf16 %v23_v28, %v22_v27  ;;  %v41_v36 = vld [vmem:[%s599_s1 + $0xb8] sm:$0xff] }
   0x9   :  { %v54_v31 = vld [vmem:[%s599_s1 + $0x120] sm:$0xff]  ;;  %v55_v32 = vld [vmem:[%s599_s1 + $0x128] sm:$0xff]  ;;  %312 = vmatpush3.bf16.msra.mxu0 %v311_v17  ;;  %v345_v34 = vpack.c.bf16 %v71_v30, %v70_v29  ;;  %v24_v37 = vld [vmem:[%s599_s1 + $0x30] sm:$0xff]  ;;  %v317_v39 = vpack.c.bf16 %v41_v36, %v40_v35 }
   0xa   :  { %314 = vmatprep.subr.bf16.mxu0 %v313_v26  ;;  %v347_v38 = vpack.c.bf16 %v55_v32, %v54_v31  ;;  %v25_v40 = vld [vmem:[%s599_s1 + $0x38] sm:$0xff]  ;;  %v72_v41 = vld [vmem:[%s599_s1 + $0x1b0] sm:$0xff]  ;;  %v42_v46 = vld [vmem:[%s599_s1 + $0xc0] sm:$0xff] }
   0xb   :  { %344 = vmatpush3.bf16.msra.mxu1 %v343_v25  ;;  %v73_v42 = vld [vmem:[%s599_s1 + $0x1b8] sm:$0xff]  ;;  %v56_v44 = vld [vmem:[%s599_s1 + $0x130] sm:$0xff]  ;;  %v43_v47 = vld [vmem:[%s599_s1 + $0xc8] sm:$0xff]  ;;  %v319_v48 = vpack.c.bf16 %v25_v40, %v24_v37 }
   0xc   :  { %346 = vmatprep.subr.bf16.mxu1 %v345_v34  ;;  %v349_v43 = vpack.c.bf16 %v73_v42, %v72_v41  ;;  %v57_v45 = vld [vmem:[%s599_s1 + $0x138] sm:$0xff]  ;;  %v74_v49 = vld [vmem:[%s599_s1 + $0x1c0] sm:$0xff]  ;;  %v75_v50 = vld [vmem:[%s599_s1 + $0x1c8] sm:$0xff]  ;;  %v321_v52 = vpack.c.bf16 %v43_v47, %v42_v46 }
   0xd   :  { %316 = vmatpush3.bf16.msra.mxu0 %v315_v33  ;;  %v351_v51 = vpack.c.bf16 %v57_v45, %v56_v44  ;;  %v26_v53 = vld [vmem:[%s599_s1 + $0x40] sm:$0xff]  ;;  %v27_v54 = vld [vmem:[%s599_s1 + $0x48] sm:$0xff]  ;;  %v353_v56 = vpack.c.bf16 %v75_v50, %v74_v49  ;;  %v44_v58 = vld [vmem:[%s599_s1 + $0xd0] sm:$0xff] }
   0xe   :  { %318 = vmatprep.subr.bf16.mxu0 %v317_v39  ;;  %v58_v55 = vld [vmem:[%s599_s1 + $0x140] sm:$0xff]  ;;  %v59_v57 = vld [vmem:[%s599_s1 + $0x148] sm:$0xff]  ;;  %v45_v59 = vld [vmem:[%s599_s1 + $0xd8] sm:$0xff]  ;;  %v323_v62 = vpack.c.bf16 %v27_v54, %v26_v53 }
   0xf   :  { %348 = vmatpush3.bf16.msra.mxu1 %v347_v38  ;;  %v76_v60 = vld [vmem:[%s599_s1 + $0x1d0] sm:$0xff]  ;;  %v77_v61 = vld [vmem:[%s599_s1 + $0x1d8] sm:$0xff]  ;;  %v355_v63 = vpack.c.bf16 %v59_v57, %v58_v55  ;;  %v325_v0 = vpack.c.bf16 %v45_v59, %v44_v58  ;;  %v46_v6 = vld [vmem:[%s599_s1 + $0xe0] sm:$0xff] }
  0x10   :  { %350 = vmatprep.subr.bf16.mxu1 %v349_v43  ;;  %v28_v1 = vld [vmem:[%s599_s1 + $0x50] sm:$0xff]  ;;  %v29_v2 = vld [vmem:[%s599_s1 + $0x58] sm:$0xff]  ;;  %v357_v4 = vpack.c.bf16 %v77_v61, %v76_v60  ;;  %v47_v7 = vld [vmem:[%s599_s1 + $0xe8] sm:$0xff] }
  0x11   :  { %320 = vmatpush3.bf16.msra.mxu0 %v319_v48  ;;  %v60_v3 = vld [vmem:[%s599_s1 + $0x150] sm:$0xff]  ;;  %v61_v5 = vld [vmem:[%s599_s1 + $0x158] sm:$0xff]  ;;  %v78_v8 = vld [vmem:[%s599_s1 + $0x1e0] sm:$0xff]  ;;  %v327_v10 = vpack.c.bf16 %v29_v2, %v28_v1  ;;  %v329_v14 = vpack.c.bf16 %v47_v7, %v46_v6 }
  0x12   :  { %322 = vmatprep.subr.bf16.mxu0 %v321_v52  ;;  %v79_v9 = vld [vmem:[%s599_s1 + $0x1e8] sm:$0xff]  ;;  %v30_v11 = vld [vmem:[%s599_s1 + $0x60] sm:$0xff]  ;;  %v359_v13 = vpack.c.bf16 %v61_v5, %v60_v3  ;;  %v48_v19 = vld [vmem:[%s599_s1 + $0xf0] sm:$0xff] }
  0x13   :  { %352 = vmatpush3.bf16.msra.mxu1 %v351_v51  ;;  %v31_v12 = vld [vmem:[%s599_s1 + $0x68] sm:$0xff]  ;;  %v62_v15 = vld [vmem:[%s599_s1 + $0x160] sm:$0xff]  ;;  %v361_v18 = vpack.c.bf16 %v79_v9, %v78_v8  ;;  %v49_v20 = vld [vmem:[%s599_s1 + $0xf8] sm:$0xff] }
  0x14   :  { %354 = vmatprep.subr.bf16.mxu1 %v353_v56  ;;  %v63_v16 = vld [vmem:[%s599_s1 + $0x168] sm:$0xff]  ;;  %v17_v21 = vld [vmem:[%s600_s0 + $0x18] sm:$0xff]  ;;  %v80_v22 = vld [vmem:[%s599_s1 + $0x1f0] sm:$0xff]  ;;  %v331_v24 = vpack.c.bf16 %v31_v12, %v30_v11  ;;  %v333_v26 = vpack.c.bf16 %v49_v20, %v48_v19 }
  0x15   :  { %324 = vmatpush3.bf16.msra.mxu0 %v323_v62  ;;  %v15_v17 = vld [vmem:[%s600_s0 + $0x8] sm:$0xff]  ;;  %v81_v23 = vld [vmem:[%s599_s1 + $0x1f8] sm:$0xff]  ;;  %223 = vmatprep.mubr.f32.mxu1 %v17_v21  ;;  %v363_v25 = vpack.c.bf16 %v63_v16, %v62_v15  ;;  %v32_v27 = vld [vmem:[%s599_s1 + $0x70] sm:$0xff] }
  0x16   :  { %326 = vmatprep.subr.bf16.mxu0 %v325_v0  ;;  %153 = vmatprep.mubr.f32.mxu0 %v15_v17  ;;  %v33_v28 = vld [vmem:[%s599_s1 + $0x78] sm:$0xff]  ;;  %v365_v29 = vpack.c.bf16 %v81_v23, %v80_v22  ;;  %v64_v30 = vld [vmem:[%s599_s1 + $0x170] sm:$0xff]  ;;  %v14_v34 = vld [vmem:[%s600_s0] sm:$0xff] }
  0x17   :  { %356 = vmatpush3.bf16.msra.mxu1 %v355_v63  ;;  %v65_v31 = vld [vmem:[%s599_s1 + $0x178] sm:$0xff]  ;;  %v335_v32 = vpack.c.bf16 %v33_v28, %v32_v27  ;;  %v16_v35 = vld [vmem:[%s600_s0 + $0x10] sm:$0xff]  ;;  %v234_v37 = vld [vmem:[%s601_s2] ss:$0 sm:$0xff] }
  0x18   :  { %358 = vmatprep.subr.bf16.mxu1 %v357_v4  ;;  %v367_v33 = vpack.c.bf16 %v65_v31, %v64_v30 }
  0x19   :  { %328 = vmatpush3.bf16.msra.mxu0 %v327_v10 }
  0x1a   :  { %330 = vmatprep.subr.bf16.mxu0 %v329_v14 }
  0x1b   :  { %360 = vmatpush3.bf16.msra.mxu1 %v359_v13 }
  0x1c   :  { %362 = vmatprep.subr.bf16.mxu1 %v361_v18 }
  0x1d   :  { %332 = vmatpush3.bf16.msra.mxu0 %v331_v24 }
  0x1e   :  { %334 = vmatprep.subr.bf16.mxu0 %v333_v26 }
  0x1f   :  { %364 = vmatpush3.bf16.msra.mxu1 %v363_v25 }
  0x20   :  { %366 = vmatprep.subr.bf16.mxu1 %v365_v29 }
  0x21   :  { %336 = vmatpush3.bf16.msra.mxu0 %v335_v32 }
  0x23   :  { %368 = vmatpush3.bf16.msra.mxu1 %v367_v33 }
  0x24   :  { %154 = vmatmul.mubr.f32.vlgmr.msra.gmra.mrb[0].mxu0 %v14_v34 }
  0x26   :  { %224 = vmatmul.mubr.f32.vlgmr.msra.gmra.mrb[0].mxu1 %v16_v35 }
  0xf7   :  { %v267_v36 = vpop.f32.mrb[0].mxu0 }
  0xf8   :  { %v268_v38 = vpop.f32.mrb[1].mxu0 }
  0xf9   :  { %v302_v39 = vpop.f32.mrb[0].mxu1  ;;  %v269_v40 = vadd.f32 %v268_v38, %v267_v36 }
  0xfa   :  { %v303_v41 = vpop.f32.mrb[1].mxu1 }
  0xfb   :  { %v304_v42 = vadd.f32 %v303_v41, %v302_v39  ;;  %v156_v43 = vadd.f32 %v269_v40, %v234_v37 }
  0xfd   :  { %v226_v44 = vadd.f32 %v304_v42, %v156_v43 }
  0xff   :  { %229 = vst [vmem:[%s602_s3] sm:$0xff] %v226_v44 }

</bundles_post_ra>
